<compile_context>
chip_gen: v7x
topology: tpu7x:2x2x1
jax: 0.10.0
libtpu: 0.0.40
codegen_flags: <defaults>
</compile_context>

<pallas_src>
import functools
import itertools
import re

import numpy as np
import jax
import jax.numpy as jnp
from jax.experimental import pallas as pl
from jax.experimental.pallas import tpu as pltpu


# ----------------------------------------------------------------------------
# host-side glue: equivalent of _get_nontrivial_subset_list + set_subspace_basis
# ----------------------------------------------------------------------------
def _get_nontrivial_subset_list(num_partite):
    return [y for x in range(1, num_partite)
            for y in itertools.combinations(range(num_partite), x)]


def _kept_subsets(num_partite):
    """One representative per {subset, complement} pair (their purities are
    exactly equal for any linear combination), weight 2 in the loss."""
    kept = []
    for sub in _get_nontrivial_subset_list(num_partite):
        comp = tuple(sorted(set(range(num_partite)) - set(sub)))
        if (len(sub) < len(comp)) or (len(sub) == len(comp) and 0 in sub):
            kept.append(sub)
    return kept


def _round_up(x, m):
    return ((x + m - 1) // m) * m


def build_subset_terms(np0, zero_eps=1e-10):
    """Host-side equivalent of set_subspace_basis (use_tensor5=False), with
    complement deduplication.  Returns (term, weight, kept_subsets, N0, rank)
    where term is (S, rank, 2, Apad, Bpad) float32 (Re/Im planes)."""
    np0 = np.asarray(np0, dtype=np.complex128)
    N1 = np0.shape[0]
    dim_list = np0.shape[1:]
    N0 = len(dim_list)
    assert N0 >= 2 and all(x >= 2 for x in dim_list)
    _, s, v = np.linalg.svd(np0.reshape(N1, -1), full_matrices=False)
    basis = v[s > zero_eps].reshape(-1, *dim_list)
    rank = basis.shape[0]
    kept = _kept_subsets(N0)
    terms = []
    for ind0 in kept:
        ind1 = [x + 1 for x in ind0]
        dA = int(np.prod([dim_list[x - 1] for x in ind1]))
        rest = sorted(set(range(1, N0 + 1)) - set(ind1))
        t = basis.transpose([0] + ind1 + rest).reshape(rank, dA, -1)
        # orient the larger physical dim onto the 128-lane axis (purity is
        # invariant under transposition of tmp0) -> smaller Gram, less padding
        if t.shape[1] > t.shape[2]:
            t = np.ascontiguousarray(t.transpose(0, 2, 1))
        terms.append(t)
    S = len(terms)
    Apad = max(8, _round_up(max(t.shape[1] for t in terms), 8))
    Bpad = max(128, _round_up(max(t.shape[2] for t in terms), 128))
    term = np.zeros((S, rank, 2, Apad, Bpad), np.float32)
    for i, t in enumerate(terms):
        A, B = t.shape[1], t.shape[2]
        term[i, :, 0, :A, :B] = t.real.astype(np.float32)
        term[i, :, 1, :A, :B] = t.imag.astype(np.float32)
    weight = np.full((S,), 2.0, np.float64)   # complement multiplicity
    return term, weight, kept, N0, rank


# ----------------------------------------------------------------------------
# hardware-aware blocking helpers
# ----------------------------------------------------------------------------
def _tpu_generation():
    try:
        kind = str(jax.devices()[0].device_kind)
    except Exception:
        return None
    m = re.search(r"(\d+)", kind)
    return int(m.group(1)) if m else None


def _vmem_capacity_bytes(gen):
    try:
        return int(pltpu.get_tpu_info().vmem_capacity_bytes)
    except Exception:
        return (64 << 20) if (gen is not None and gen >= 7) else (128 << 20)


def _choose_blocking(num_subsets, per_subset_bytes, gen):
    """Byte-targeted subsets-per-step (~3 MiB/step on v5e/v6e, ~8 MiB on v7x);
    on v7x force an even step count >= 2 so both TensorCores get work."""
    target = (8 << 20) if gen == 7 else (3 << 20)
    ss = int(max(1, min(num_subsets, target // max(per_subset_bytes, 1))))
    nsteps = -(-num_subsets // ss)
    if gen == 7 and num_subsets >= 2:
        nsteps = max(2, nsteps)
        if nsteps % 2:
            nsteps += 1
        ss = -(-num_subsets // nsteps)
    return ss, nsteps


# ----------------------------------------------------------------------------
# Pallas kernel
# ----------------------------------------------------------------------------
def _concurrence_kernel(ns_per_step, num_basis, apad, bpad, nb, unrolled,
                        gram_precision,
                        cr_ref, ci_ref, term_ref, purity_ref, x_ref):
    # cr_ref/ci_ref : (rank,) f32 scalar prefetch (SMEM) -- Re/Im of coeff
    # term_ref      : (ns_per_step, rank, 2, Apad, Bpad) f32 VMEM block
    # purity_ref    : (ns_per_step, 8, 128) f32 VMEM block (scalar broadcast)
    # x_ref         : (nb*2*Apad, Bpad) f32 VMEM scratch holding stacked
    #                 [Re; Im] rows for up to nb subsets (one batched Gram)

    # hoist coefficient SMEM reads out of the per-subset loop
    if num_basis <= 8:
        cr = [cr_ref[k] for k in range(num_basis)]
        ci = [ci_ref[k] for k in range(num_basis)]

    def lincomb_into_slot(si, j):
        # tmp0 = sum_k coeff_k * term[si, k]; write Re rows to x_ref slot j,
        # Im rows just below them (in place -- no concatenate copy).
        r0 = 2 * j * apad
        if num_basis <= 8:
            t0r = cr[0] * term_ref[si, 0, 0] - ci[0] * term_ref[si, 0, 1]
            t0i = cr[0] * term_ref[si, 0, 1] + ci[0] * term_ref[si, 0, 0]
            for k in range(1, num_basis):
                tr = term_ref[si, k, 0]
                ti = term_ref[si, k, 1]
                t0r = t0r + cr[k] * tr - ci[k] * ti
                t0i = t0i + cr[k] * ti + ci[k] * tr
            x_ref[r0:r0 + apad, :] = t0r
            x_ref[r0 + apad:r0 + 2 * apad, :] = t0i
        else:
            # large rank: real loop over k; chunk the lane axis so the (Re, Im)
            # carry stays vreg-resident instead of spilling to VMEM
            if bpad <= 512:
                csz = bpad
            elif bpad % 512 == 0:
                csz = 512
            elif bpad % 256 == 0:
                csz = 256
            else:
                csz = 128
            for c in range(0, bpad, csz):
                def body(k, carry):
                    ar, ai = carry
                    tr = term_ref[si, k, 0, :, pl.ds(c, csz)]
                    ti = term_ref[si, k, 1, :, pl.ds(c, csz)]
                    ckr = cr_ref[k]
                    cki = ci_ref[k]
                    return (ar + ckr * tr - cki * ti, ai + ckr * ti + cki * tr)
                z = jnp.zeros((apad, csz), jnp.float32)
                ar, ai = jax.lax.fori_loop(0, num_basis, body, (z, z), unroll=2)
                x_ref[r0:r0 + apad, c:c + csz] = ar
                x_ref[r0 + apad:r0 + 2 * apad, c:c + csz] = ai

    def purity_from_gram(p, j):
        # diagonal 2A x 2A block j of P = X X^T gives G = tmp0 tmp0^H:
        #   Re(G) = P11 + P22 ;  Im(G) = P21 - P12 ;  purity = ||G||_F^2
        r0 = 2 * j * apad
        p11 = p[r0:r0 + apad, r0:r0 + apad]
        p22 = p[r0 + apad:r0 + 2 * apad, r0 + apad:r0 + 2 * apad]
        p12 = p[r0:r0 + apad, r0 + apad:r0 + 2 * apad]
        p21 = p[r0 + apad:r0 + 2 * apad, r0:r0 + apad]
        t1r = p11 + p22
        t1i = p21 - p12
        return jnp.sum(t1r * t1r + t1i * t1i)

    def store(si, val):
        purity_ref[si] = jnp.broadcast_to(val, (8, 128)).astype(jnp.float32)

    if unrolled:
        # few subsets per grid step: fully unrolled; Gram matmuls batched so a
        # single MXU pass covers up to nb subsets (fills the MXU rows)
        for g0 in range(0, ns_per_step, nb):
            gsz = min(nb, ns_per_step - g0)
            for j in range(gsz):
                lincomb_into_slot(g0 + j, j)
            rows = gsz * 2 * apad
            x = x_ref[:rows, :]
            p = jax.lax.dot_general(x, x, (((1,), (1,)), ((), ())),
                                    preferred_element_type=jnp.float32,
                                    precision=gram_precision)
            for j in range(gsz):
                store(g0 + j, purity_from_gram(p, j))
    else:
        # many subsets per step: real loop keeps vreg pressure / code size flat
        # TODO(synk): Gram batching (nb > 1) not applied on this dynamic path.
        def body(si, carry):
            lincomb_into_slot(si, 0)
            x = x_ref[:2 * apad, :]
            p = jax.lax.dot_general(x, x, (((1,), (1,)), ((), ())),
                                    preferred_element_type=jnp.float32,
                                    precision=gram_precision)
            store(si, purity_from_gram(p, 0))
            return carry
        jax.lax.fori_loop(0, ns_per_step, body, 0)


# ----------------------------------------------------------------------------
# wrapper
# ----------------------------------------------------------------------------
def subspace_generalized_concurrence(coeff, term, subset_weight, num_partite,
                                     *, subsets_per_step=None,
                                     gram_precision=jax.lax.Precision.HIGHEST):
    """coeff: (rank,) complex64; term: (S, rank, 2, Apad, Bpad) float32;
    subset_weight: (S,) host array (2.0 for complement-deduplicated subsets).

    Returns (purity[S] device array, loss python float computed in float64)."""
    S, rank, two, apad, bpad = term.shape
    assert two == 2
    cr = jnp.real(coeff).astype(jnp.float32)
    ci = jnp.imag(coeff).astype(jnp.float32)

    gen = _tpu_generation()
    per_subset_bytes = rank * 2 * apad * bpad * 4
    if subsets_per_step is None:
        ss, nsteps = _choose_blocking(S, per_subset_bytes, gen)
    else:
        ss = int(subsets_per_step)
        nsteps = -(-S // ss)
    s_pad = ss * nsteps
    if s_pad != S:   # zero-padded subsets have purity 0 and are sliced off
        term = jnp.pad(term, ((0, s_pad - S),) + ((0, 0),) * 4)

    unrolled = ss <= 16
    mxu_rows = 256 if (gen is None or gen >= 6) else 128
    nb = max(1, min(ss, mxu_rows // (2 * apad))) if unrolled else 1

    block_bytes = ss * per_subset_bytes
    out_block_bytes = ss * 8 * 128 * 4
    scratch_bytes = nb * 2 * apad * bpad * 4
    nbuf_in = 1 if nsteps == 1 else 2      # fused path: single input buffer
    need = nbuf_in * block_bytes + 2 * out_block_bytes + scratch_bytes + (2 << 20)
    vmem_cap = int(0.70 * _vmem_capacity_bytes(gen))
    vmem_limit = int(min(vmem_cap, max(need + (2 << 20), 32 << 20)))

    kernel = functools.partial(_concurrence_kernel, ss, rank, apad, bpad, nb,
                               unrolled, gram_precision)
    semantics = ("arbitrary",) if nsteps == 1 else ("parallel",)

    gram_rows = nb * 2 * apad
    n_groups = -(-ss // nb)
    flops = int(s_pad * 8 * rank * apad * bpad                # lin-comb (VPU)
                + nsteps * n_groups * 2 * gram_rows * gram_rows * bpad  # MXU
                + s_pad * 8 * apad * apad)                    # combine+reduce
    bytes_accessed = int(s_pad * per_subset_bytes + 2 * rank * 4
                         + s_pad * 8 * 128 * 4)

    def _run(single_buffer_input):
        spec_kwargs = ({"pipeline_mode": pl.Buffered(1)}
                       if single_buffer_input else {})
        in_spec = pl.BlockSpec((ss, rank, 2, apad, bpad),
                               lambda s, _cr, _ci: (s, 0, 0, 0, 0),
                               **spec_kwargs)
        out_spec = pl.BlockSpec((ss, 8, 128), lambda s, _cr, _ci: (s, 0, 0))
        return pl.pallas_call(
            kernel,
            out_shape=jax.ShapeDtypeStruct((s_pad, 8, 128), jnp.float32),
            grid_spec=pltpu.PrefetchScalarGridSpec(
                num_scalar_prefetch=2,          # coeff real / imag -> SMEM
                grid=(nsteps,),
                in_specs=[in_spec],
                out_specs=out_spec,
                scratch_shapes=[pltpu.VMEM((nb * 2 * apad, bpad), jnp.float32)]),
            compiler_params=pltpu.CompilerParams(
                dimension_semantics=semantics,
                vmem_limit_bytes=vmem_limit),
            cost_estimate=pl.CostEstimate(flops=flops, transcendentals=0,
                                          bytes_accessed=bytes_accessed),
        )(cr, ci, term)

    if nsteps == 1:
        # single grid step: double buffering buys no overlap, halve input VMEM
        try:
            purity_pad = _run(True)
        except Exception:   # pipeline_mode unsupported -> default double buffer
            purity_pad = _run(False)
    else:
        purity_pad = _run(False)

    purity = purity_pad[:S, 0, 0]
    # final scalar loss on host in float64 (avoids f32 catastrophic
    # cancellation near the optimum loss -> 0); weight=2 accounts for
    # purity(subset) == purity(complement).
    factor = 2.0 ** (3 - num_partite)
    purity_f64 = np.asarray(jax.device_get(purity), np.float64)
    w = np.asarray(subset_weight, np.float64)
    loss = 4.0 - factor - factor * float(np.dot(w, purity_f64))
    return purity, loss


# ----------------------------------------------------------------------------
# pure-numpy reference of forward() (subset_tensor_list branch, complex128)
# ----------------------------------------------------------------------------
def reference_forward(np0, coeff, zero_eps=1e-10):
    np0 = np.asarray(np0, np.complex128)
    N1 = np0.shape[0]
    dim_list = np0.shape[1:]
    N0 = len(dim_list)
    _, s, v = np.linalg.svd(np0.reshape(N1, -1), full_matrices=False)
    basis = v[s > zero_eps].reshape(-1, *dim_list)
    purity = {}
    for ind0 in _get_nontrivial_subset_list(N0):
        ind1 = [x + 1 for x in ind0]
        dA = int(np.prod([dim_list[x - 1] for x in ind1]))
        rest = sorted(set(range(1, N0 + 1)) - set(ind1))
        t = basis.transpose([0] + ind1 + rest).reshape(basis.shape[0], dA, -1)
        tmp0 = np.tensordot(coeff, t, axes=(0, 0))
        tmp1 = tmp0 @ tmp0.conj().T
        purity[ind0] = float(np.vdot(tmp1.reshape(-1), tmp1.reshape(-1)).real)
    factor = 2.0 ** (3 - N0)
    loss = 4.0 - factor - factor * sum(purity.values())
    return purity, loss


# ----------------------------------------------------------------------------
if __name__ == "__main__":
    key = jax.random.PRNGKey(0)
    k0, k1, k2, k3 = jax.random.split(key, 4)

    dim_subspace = 3          # N1 (>= 2)
    dim_list = (2, 2, 2)      # tripartite qubit system -> num_partite = 3

    # deterministic synthetic subspace basis np0: (N1, d1, d2, d3) complex
    np0 = (np.asarray(jax.random.normal(k0, (dim_subspace,) + dim_list), np.float64)
           + 1j * np.asarray(jax.random.normal(k1, (dim_subspace,) + dim_list), np.float64))
    term, weight, kept_subsets, num_partite, rank = build_subset_terms(np0)

    # coeff: deterministic point on the complex unit sphere
    # (stand-in for numqi.manifold.Sphere(dim_subspace, complex128)())
    coeff_np = (np.asarray(jax.random.normal(k2, (rank,)), np.float64)
                + 1j * np.asarray(jax.random.normal(k3, (rank,)), np.float64))
    coeff_np = coeff_np / np.linalg.norm(coeff_np)

    coeff_j = jnp.asarray(coeff_np, jnp.complex64)
    term_j = jnp.asarray(term)

    ref_purity, ref_loss = reference_forward(np0, coeff_np)
    ref_kept = np.array([ref_purity[s] for s in kept_subsets])

    # path 1: auto blocking (fused single step on small problems, byte-targeted
    # multi-step grid otherwise; >= 2 even steps on v7x for both TensorCores)
    purity, loss = subspace_generalized_concurrence(coeff_j, term_j, weight,
                                                    num_partite)
    purity = jax.block_until_ready(purity)
    assert np.allclose(np.asarray(purity), ref_kept, rtol=1e-4, atol=1e-4), \
        (np.asarray(purity), ref_kept)
    assert np.allclose(float(loss), ref_loss, rtol=1e-4, atol=1e-4), (loss, ref_loss)

    # path 2: explicit per-subset grid (double-buffered DMA, "parallel" axis)
    purity2, loss2 = subspace_generalized_concurrence(coeff_j, term_j, weight,
                                                      num_partite,
                                                      subsets_per_step=1)
    purity2 = jax.block_until_ready(purity2)
    assert np.allclose(np.asarray(purity2), ref_kept, rtol=1e-4, atol=1e-4), \
        (np.asarray(purity2), ref_kept)
    assert np.allclose(float(loss2), ref_loss, rtol=1e-4, atol=1e-4), (loss2, ref_loss)

    print("KERNEL_OK")
</pallas_src>

<mosaic_0001>
module attributes {stable_mosaic.version = 11 : i64} {
  func.func @_concurrence_kernel(%arg0: i32, %arg1: memref<3xf32, #tpu.memory_space<smem>>, %arg2: memref<3xf32, #tpu.memory_space<smem>>, %arg3: memref<3x3x2x8x128xf32, #tpu.memory_space<vmem>>, %arg4: memref<3x8x128xf32, #tpu.memory_space<vmem>>, %arg5: memref<48x128xf32, #tpu.memory_space<vmem>>) attributes {dimension_semantics = [#tpu.dimension_semantics<arbitrary>], iteration_bounds = array<i64: 1>, scalar_prefetch = 2 : i64, scratch_operands = 1 : i64, tpu.core_type = #tpu.core_type<tc>, window_params = [{pipeline_mode = #tpu.pipeline_mode<synchronous>, transform_indices = @transform_0, window_bounds = array<i64: 3, 3, 2, 8, 128>}, {transform_indices = @transform_1, window_bounds = array<i64: 3, 8, 128>}]} {
    %c0 = arith.constant 0 : index
    %0 = memref.load %arg1[%c0] : memref<3xf32, #tpu.memory_space<smem>>
    %c1 = arith.constant 1 : index
    %1 = memref.load %arg1[%c1] : memref<3xf32, #tpu.memory_space<smem>>
    %c2 = arith.constant 2 : index
    %2 = memref.load %arg1[%c2] : memref<3xf32, #tpu.memory_space<smem>>
    %c0_0 = arith.constant 0 : index
    %3 = memref.load %arg2[%c0_0] : memref<3xf32, #tpu.memory_space<smem>>
    %c1_1 = arith.constant 1 : index
    %4 = memref.load %arg2[%c1_1] : memref<3xf32, #tpu.memory_space<smem>>
    %c2_2 = arith.constant 2 : index
    %5 = memref.load %arg2[%c2_2] : memref<3xf32, #tpu.memory_space<smem>>
    %c0_3 = arith.constant 0 : index
    %c0_4 = arith.constant 0 : index
    %c0_5 = arith.constant 0 : index
    %c0_6 = arith.constant 0 : index
    %c0_7 = arith.constant 0 : index
    %6 = vector.load %arg3[%c0_3, %c0_4, %c0_5, %c0_6, %c0_7] : memref<3x3x2x8x128xf32, #tpu.memory_space<vmem>>, vector<1x1x1x8x128xf32>
    %7 = vector.shape_cast %6 : vector<1x1x1x8x128xf32> to vector<8x128xf32>
    %8 = vector.broadcast %0 : f32 to vector<8x128xf32>
    %9 = arith.mulf %8, %7 : vector<8x128xf32>
    %c0_8 = arith.constant 0 : index
    %c0_9 = arith.constant 0 : index
    %c1_10 = arith.constant 1 : index
    %c0_11 = arith.constant 0 : index
    %c0_12 = arith.constant 0 : index
    %10 = vector.load %arg3[%c0_8, %c0_9, %c1_10, %c0_11, %c0_12] : memref<3x3x2x8x128xf32, #tpu.memory_space<vmem>>, vector<1x1x1x8x128xf32>
    %11 = vector.shape_cast %10 : vector<1x1x1x8x128xf32> to vector<8x128xf32>
    %12 = vector.broadcast %3 : f32 to vector<8x128xf32>
    %13 = arith.mulf %12, %11 : vector<8x128xf32>
    %14 = arith.subf %9, %13 : vector<8x128xf32>
    %c0_13 = arith.constant 0 : index
    %c0_14 = arith.constant 0 : index
    %c1_15 = arith.constant 1 : index
    %c0_16 = arith.constant 0 : index
    %c0_17 = arith.constant 0 : index
    %15 = vector.load %arg3[%c0_13, %c0_14, %c1_15, %c0_16, %c0_17] : memref<3x3x2x8x128xf32, #tpu.memory_space<vmem>>, vector<1x1x1x8x128xf32>
    %16 = vector.shape_cast %15 : vector<1x1x1x8x128xf32> to vector<8x128xf32>
    %17 = vector.broadcast %0 : f32 to vector<8x128xf32>
    %18 = arith.mulf %17, %16 : vector<8x128xf32>
    %c0_18 = arith.constant 0 : index
    %c0_19 = arith.constant 0 : index
    %c0_20 = arith.constant 0 : index
    %c0_21 = arith.constant 0 : index
    %c0_22 = arith.constant 0 : index
    %19 = vector.load %arg3[%c0_18, %c0_19, %c0_20, %c0_21, %c0_22] : memref<3x3x2x8x128xf32, #tpu.memory_space<vmem>>, vector<1x1x1x8x128xf32>
    %20 = vector.shape_cast %19 : vector<1x1x1x8x128xf32> to vector<8x128xf32>
    %21 = vector.broadcast %3 : f32 to vector<8x128xf32>
    %22 = arith.mulf %21, %20 : vector<8x128xf32>
    %23 = arith.addf %18, %22 : vector<8x128xf32>
    %c0_23 = arith.constant 0 : index
    %c1_24 = arith.constant 1 : index
    %c0_25 = arith.constant 0 : index
    %c0_26 = arith.constant 0 : index
    %c0_27 = arith.constant 0 : index
    %24 = vector.load %arg3[%c0_23, %c1_24, %c0_25, %c0_26, %c0_27] : memref<3x3x2x8x128xf32, #tpu.memory_space<vmem>>, vector<1x1x1x8x128xf32>
    %25 = vector.shape_cast %24 : vector<1x1x1x8x128xf32> to vector<8x128xf32>
    %c0_28 = arith.constant 0 : index
    %c1_29 = arith.constant 1 : index
    %c1_30 = arith.constant 1 : index
    %c0_31 = arith.constant 0 : index
    %c0_32 = arith.constant 0 : index
    %26 = vector.load %arg3[%c0_28, %c1_29, %c1_30, %c0_31, %c0_32] : memref<3x3x2x8x128xf32, #tpu.memory_space<vmem>>, vector<1x1x1x8x128xf32>
    %27 = vector.shape_cast %26 : vector<1x1x1x8x128xf32> to vector<8x128xf32>
    %28 = vector.broadcast %1 : f32 to vector<8x128xf32>
    %29 = arith.mulf %28, %25 : vector<8x128xf32>
    %30 = arith.addf %14, %29 : vector<8x128xf32>
    %31 = vector.broadcast %4 : f32 to vector<8x128xf32>
    %32 = arith.mulf %31, %27 : vector<8x128xf32>
    %33 = arith.subf %30, %32 : vector<8x128xf32>
    %34 = vector.broadcast %1 : f32 to vector<8x128xf32>
    %35 = arith.mulf %34, %27 : vector<8x128xf32>
    %36 = arith.addf %23, %35 : vector<8x128xf32>
    %37 = vector.broadcast %4 : f32 to vector<8x128xf32>
    %38 = arith.mulf %37, %25 : vector<8x128xf32>
    %39 = arith.addf %36, %38 : vector<8x128xf32>
    %c0_33 = arith.constant 0 : index
    %c2_34 = arith.constant 2 : index
    %c0_35 = arith.constant 0 : index
    %c0_36 = arith.constant 0 : index
    %c0_37 = arith.constant 0 : index
    %40 = vector.load %arg3[%c0_33, %c2_34, %c0_35, %c0_36, %c0_37] : memref<3x3x2x8x128xf32, #tpu.memory_space<vmem>>, vector<1x1x1x8x128xf32>
    %41 = vector.shape_cast %40 : vector<1x1x1x8x128xf32> to vector<8x128xf32>
    %c0_38 = arith.constant 0 : index
    %c2_39 = arith.constant 2 : index
    %c1_40 = arith.constant 1 : index
    %c0_41 = arith.constant 0 : index
    %c0_42 = arith.constant 0 : index
    %42 = vector.load %arg3[%c0_38, %c2_39, %c1_40, %c0_41, %c0_42] : memref<3x3x2x8x128xf32, #tpu.memory_space<vmem>>, vector<1x1x1x8x128xf32>
    %43 = vector.shape_cast %42 : vector<1x1x1x8x128xf32> to vector<8x128xf32>
    %44 = vector.broadcast %2 : f32 to vector<8x128xf32>
    %45 = arith.mulf %44, %41 : vector<8x128xf32>
    %46 = arith.addf %33, %45 : vector<8x128xf32>
    %47 = vector.broadcast %5 : f32 to vector<8x128xf32>
    %48 = arith.mulf %47, %43 : vector<8x128xf32>
    %49 = arith.subf %46, %48 : vector<8x128xf32>
    %50 = vector.broadcast %2 : f32 to vector<8x128xf32>
    %51 = arith.mulf %50, %43 : vector<8x128xf32>
    %52 = arith.addf %39, %51 : vector<8x128xf32>
    %53 = vector.broadcast %5 : f32 to vector<8x128xf32>
    %54 = arith.mulf %53, %41 : vector<8x128xf32>
    %55 = arith.addf %52, %54 : vector<8x128xf32>
    %c0_43 = arith.constant 0 : index
    %c0_44 = arith.constant 0 : index
    %56 = vector.load %arg5[%c0_43, %c0_44] : memref<48x128xf32, #tpu.memory_space<vmem>>, vector<8x128xf32>
    tpu.vector_store %arg5[%c0_43, %c0_44], %49 {strides = array<i32>} : memref<48x128xf32, #tpu.memory_space<vmem>>, vector<8x128xf32>,
    %c8 = arith.constant 8 : index
    %c0_45 = arith.constant 0 : index
    %57 = vector.load %arg5[%c8, %c0_45] : memref<48x128xf32, #tpu.memory_space<vmem>>, vector<8x128xf32>
    tpu.vector_store %arg5[%c8, %c0_45], %55 {strides = array<i32>} : memref<48x128xf32, #tpu.memory_space<vmem>>, vector<8x128xf32>,
    %c1_46 = arith.constant 1 : index
    %c0_47 = arith.constant 0 : index
    %c0_48 = arith.constant 0 : index
    %c0_49 = arith.constant 0 : index
    %c0_50 = arith.constant 0 : index
    %58 = vector.load %arg3[%c1_46, %c0_47, %c0_48, %c0_49, %c0_50] : memref<3x3x2x8x128xf32, #tpu.memory_space<vmem>>, vector<1x1x1x8x128xf32>
    %59 = vector.shape_cast %58 : vector<1x1x1x8x128xf32> to vector<8x128xf32>
    %60 = vector.broadcast %0 : f32 to vector<8x128xf32>
    %61 = arith.mulf %60, %59 : vector<8x128xf32>
    %c1_51 = arith.constant 1 : index
    %c0_52 = arith.constant 0 : index
    %c1_53 = arith.constant 1 : index
    %c0_54 = arith.constant 0 : index
    %c0_55 = arith.constant 0 : index
    %62 = vector.load %arg3[%c1_51, %c0_52, %c1_53, %c0_54, %c0_55] : memref<3x3x2x8x128xf32, #tpu.memory_space<vmem>>, vector<1x1x1x8x128xf32>
    %63 = vector.shape_cast %62 : vector<1x1x1x8x128xf32> to vector<8x128xf32>
    %64 = vector.broadcast %3 : f32 to vector<8x128xf32>
    %65 = arith.mulf %64, %63 : vector<8x128xf32>
    %66 = arith.subf %61, %65 : vector<8x128xf32>
    %c1_56 = arith.constant 1 : index
    %c0_57 = arith.constant 0 : index
    %c1_58 = arith.constant 1 : index
    %c0_59 = arith.constant 0 : index
    %c0_60 = arith.constant 0 : index
    %67 = vector.load %arg3[%c1_56, %c0_57, %c1_58, %c0_59, %c0_60] : memref<3x3x2x8x128xf32, #tpu.memory_space<vmem>>, vector<1x1x1x8x128xf32>
    %68 = vector.shape_cast %67 : vector<1x1x1x8x128xf32> to vector<8x128xf32>
    %69 = vector.broadcast %0 : f32 to vector<8x128xf32>
    %70 = arith.mulf %69, %68 : vector<8x128xf32>
    %c1_61 = arith.constant 1 : index
    %c0_62 = arith.constant 0 : index
    %c0_63 = arith.constant 0 : index
    %c0_64 = arith.constant 0 : index
    %c0_65 = arith.constant 0 : index
    %71 = vector.load %arg3[%c1_61, %c0_62, %c0_63, %c0_64, %c0_65] : memref<3x3x2x8x128xf32, #tpu.memory_space<vmem>>, vector<1x1x1x8x128xf32>
    %72 = vector.shape_cast %71 : vector<1x1x1x8x128xf32> to vector<8x128xf32>
    %73 = vector.broadcast %3 : f32 to vector<8x128xf32>
    %74 = arith.mulf %73, %72 : vector<8x128xf32>
    %75 = arith.addf %70, %74 : vector<8x128xf32>
    %c1_66 = arith.constant 1 : index
    %c1_67 = arith.constant 1 : index
    %c0_68 = arith.constant 0 : index
    %c0_69 = arith.constant 0 : index
    %c0_70 = arith.constant 0 : index
    %76 = vector.load %arg3[%c1_66, %c1_67, %c0_68, %c0_69, %c0_70] : memref<3x3x2x8x128xf32, #tpu.memory_space<vmem>>, vector<1x1x1x8x128xf32>
    %77 = vector.shape_cast %76 : vector<1x1x1x8x128xf32> to vector<8x128xf32>
    %c1_71 = arith.constant 1 : index
    %c1_72 = arith.constant 1 : index
    %c1_73 = arith.constant 1 : index
    %c0_74 = arith.constant 0 : index
    %c0_75 = arith.constant 0 : index
    %78 = vector.load %arg3[%c1_71, %c1_72, %c1_73, %c0_74, %c0_75] : memref<3x3x2x8x128xf32, #tpu.memory_space<vmem>>, vector<1x1x1x8x128xf32>
    %79 = vector.shape_cast %78 : vector<1x1x1x8x128xf32> to vector<8x128xf32>
    %80 = vector.broadcast %1 : f32 to vector<8x128xf32>
    %81 = arith.mulf %80, %77 : vector<8x128xf32>
    %82 = arith.addf %66, %81 : vector<8x128xf32>
    %83 = vector.broadcast %4 : f32 to vector<8x128xf32>
    %84 = arith.mulf %83, %79 : vector<8x128xf32>
    %85 = arith.subf %82, %84 : vector<8x128xf32>
    %86 = vector.broadcast %1 : f32 to vector<8x128xf32>
    %87 = arith.mulf %86, %79 : vector<8x128xf32>
    %88 = arith.addf %75, %87 : vector<8x128xf32>
    %89 = vector.broadcast %4 : f32 to vector<8x128xf32>
    %90 = arith.mulf %89, %77 : vector<8x128xf32>
    %91 = arith.addf %88, %90 : vector<8x128xf32>
    %c1_76 = arith.constant 1 : index
    %c2_77 = arith.constant 2 : index
    %c0_78 = arith.constant 0 : index
    %c0_79 = arith.constant 0 : index
    %c0_80 = arith.constant 0 : index
    %92 = vector.load %arg3[%c1_76, %c2_77, %c0_78, %c0_79, %c0_80] : memref<3x3x2x8x128xf32, #tpu.memory_space<vmem>>, vector<1x1x1x8x128xf32>
    %93 = vector.shape_cast %92 : vector<1x1x1x8x128xf32> to vector<8x128xf32>
    %c1_81 = arith.constant 1 : index
    %c2_82 = arith.constant 2 : index
    %c1_83 = arith.constant 1 : index
    %c0_84 = arith.constant 0 : index
    %c0_85 = arith.constant 0 : index
    %94 = vector.load %arg3[%c1_81, %c2_82, %c1_83, %c0_84, %c0_85] : memref<3x3x2x8x128xf32, #tpu.memory_space<vmem>>, vector<1x1x1x8x128xf32>
    %95 = vector.shape_cast %94 : vector<1x1x1x8x128xf32> to vector<8x128xf32>
    %96 = vector.broadcast %2 : f32 to vector<8x128xf32>
    %97 = arith.mulf %96, %93 : vector<8x128xf32>
    %98 = arith.addf %85, %97 : vector<8x128xf32>
    %99 = vector.broadcast %5 : f32 to vector<8x128xf32>
    %100 = arith.mulf %99, %95 : vector<8x128xf32>
    %101 = arith.subf %98, %100 : vector<8x128xf32>
    %102 = vector.broadcast %2 : f32 to vector<8x128xf32>
    %103 = arith.mulf %102, %95 : vector<8x128xf32>
    %104 = arith.addf %91, %103 : vector<8x128xf32>
    %105 = vector.broadcast %5 : f32 to vector<8x128xf32>
    %106 = arith.mulf %105, %93 : vector<8x128xf32>
    %107 = arith.addf %104, %106 : vector<8x128xf32>
    %c16 = arith.constant 16 : index
    %c0_86 = arith.constant 0 : index
    %108 = vector.load %arg5[%c16, %c0_86] : memref<48x128xf32, #tpu.memory_space<vmem>>, vector<8x128xf32>
    tpu.vector_store %arg5[%c16, %c0_86], %101 {strides = array<i32>} : memref<48x128xf32, #tpu.memory_space<vmem>>, vector<8x128xf32>,
    %c24 = arith.constant 24 : index
    %c0_87 = arith.constant 0 : index
    %109 = vector.load %arg5[%c24, %c0_87] : memref<48x128xf32, #tpu.memory_space<vmem>>, vector<8x128xf32>
    tpu.vector_store %arg5[%c24, %c0_87], %107 {strides = array<i32>} : memref<48x128xf32, #tpu.memory_space<vmem>>, vector<8x128xf32>,
    %c2_88 = arith.constant 2 : index
    %c0_89 = arith.constant 0 : index
    %c0_90 = arith.constant 0 : index
    %c0_91 = arith.constant 0 : index
    %c0_92 = arith.constant 0 : index
    %110 = vector.load %arg3[%c2_88, %c0_89, %c0_90, %c0_91, %c0_92] : memref<3x3x2x8x128xf32, #tpu.memory_space<vmem>>, vector<1x1x1x8x128xf32>
    %111 = vector.shape_cast %110 : vector<1x1x1x8x128xf32> to vector<8x128xf32>
    %112 = vector.broadcast %0 : f32 to vector<8x128xf32>
    %113 = arith.mulf %112, %111 : vector<8x128xf32>
    %c2_93 = arith.constant 2 : index
    %c0_94 = arith.constant 0 : index
    %c1_95 = arith.constant 1 : index
    %c0_96 = arith.constant 0 : index
    %c0_97 = arith.constant 0 : index
    %114 = vector.load %arg3[%c2_93, %c0_94, %c1_95, %c0_96, %c0_97] : memref<3x3x2x8x128xf32, #tpu.memory_space<vmem>>, vector<1x1x1x8x128xf32>
    %115 = vector.shape_cast %114 : vector<1x1x1x8x128xf32> to vector<8x128xf32>
    %116 = vector.broadcast %3 : f32 to vector<8x128xf32>
    %117 = arith.mulf %116, %115 : vector<8x128xf32>
    %118 = arith.subf %113, %117 : vector<8x128xf32>
    %c2_98 = arith.constant 2 : index
    %c0_99 = arith.constant 0 : index
    %c1_100 = arith.constant 1 : index
    %c0_101 = arith.constant 0 : index
    %c0_102 = arith.constant 0 : index
    %119 = vector.load %arg3[%c2_98, %c0_99, %c1_100, %c0_101, %c0_102] : memref<3x3x2x8x128xf32, #tpu.memory_space<vmem>>, vector<1x1x1x8x128xf32>
    %120 = vector.shape_cast %119 : vector<1x1x1x8x128xf32> to vector<8x128xf32>
    %121 = vector.broadcast %0 : f32 to vector<8x128xf32>
    %122 = arith.mulf %121, %120 : vector<8x128xf32>
    %c2_103 = arith.constant 2 : index
    %c0_104 = arith.constant 0 : index
    %c0_105 = arith.constant 0 : index
    %c0_106 = arith.constant 0 : index
    %c0_107 = arith.constant 0 : index
    %123 = vector.load %arg3[%c2_103, %c0_104, %c0_105, %c0_106, %c0_107] : memref<3x3x2x8x128xf32, #tpu.memory_space<vmem>>, vector<1x1x1x8x128xf32>
    %124 = vector.shape_cast %123 : vector<1x1x1x8x128xf32> to vector<8x128xf32>
    %125 = vector.broadcast %3 : f32 to vector<8x128xf32>
    %126 = arith.mulf %125, %124 : vector<8x128xf32>
    %127 = arith.addf %122, %126 : vector<8x128xf32>
    %c2_108 = arith.constant 2 : index
    %c1_109 = arith.constant 1 : index
    %c0_110 = arith.constant 0 : index
    %c0_111 = arith.constant 0 : index
    %c0_112 = arith.constant 0 : index
    %128 = vector.load %arg3[%c2_108, %c1_109, %c0_110, %c0_111, %c0_112] : memref<3x3x2x8x128xf32, #tpu.memory_space<vmem>>, vector<1x1x1x8x128xf32>
    %129 = vector.shape_cast %128 : vector<1x1x1x8x128xf32> to vector<8x128xf32>
    %c2_113 = arith.constant 2 : index
    %c1_114 = arith.constant 1 : index
    %c1_115 = arith.constant 1 : index
    %c0_116 = arith.constant 0 : index
    %c0_117 = arith.constant 0 : index
    %130 = vector.load %arg3[%c2_113, %c1_114, %c1_115, %c0_116, %c0_117] : memref<3x3x2x8x128xf32, #tpu.memory_space<vmem>>, vector<1x1x1x8x128xf32>
    %131 = vector.shape_cast %130 : vector<1x1x1x8x128xf32> to vector<8x128xf32>
    %132 = vector.broadcast %1 : f32 to vector<8x128xf32>
    %133 = arith.mulf %132, %129 : vector<8x128xf32>
    %134 = arith.addf %118, %133 : vector<8x128xf32>
    %135 = vector.broadcast %4 : f32 to vector<8x128xf32>
    %136 = arith.mulf %135, %131 : vector<8x128xf32>
    %137 = arith.subf %134, %136 : vector<8x128xf32>
    %138 = vector.broadcast %1 : f32 to vector<8x128xf32>
    %139 = arith.mulf %138, %131 : vector<8x128xf32>
    %140 = arith.addf %127, %139 : vector<8x128xf32>
    %141 = vector.broadcast %4 : f32 to vector<8x128xf32>
    %142 = arith.mulf %141, %129 : vector<8x128xf32>
    %143 = arith.addf %140, %142 : vector<8x128xf32>
    %c2_118 = arith.constant 2 : index
    %c2_119 = arith.constant 2 : index
    %c0_120 = arith.constant 0 : index
    %c0_121 = arith.constant 0 : index
    %c0_122 = arith.constant 0 : index
    %144 = vector.load %arg3[%c2_118, %c2_119, %c0_120, %c0_121, %c0_122] : memref<3x3x2x8x128xf32, #tpu.memory_space<vmem>>, vector<1x1x1x8x128xf32>
    %145 = vector.shape_cast %144 : vector<1x1x1x8x128xf32> to vector<8x128xf32>
    %c2_123 = arith.constant 2 : index
    %c2_124 = arith.constant 2 : index
    %c1_125 = arith.constant 1 : index
    %c0_126 = arith.constant 0 : index
    %c0_127 = arith.constant 0 : index
    %146 = vector.load %arg3[%c2_123, %c2_124, %c1_125, %c0_126, %c0_127] : memref<3x3x2x8x128xf32, #tpu.memory_space<vmem>>, vector<1x1x1x8x128xf32>
    %147 = vector.shape_cast %146 : vector<1x1x1x8x128xf32> to vector<8x128xf32>
    %148 = vector.broadcast %2 : f32 to vector<8x128xf32>
    %149 = arith.mulf %148, %145 : vector<8x128xf32>
    %150 = arith.addf %137, %149 : vector<8x128xf32>
    %151 = vector.broadcast %5 : f32 to vector<8x128xf32>
    %152 = arith.mulf %151, %147 : vector<8x128xf32>
    %153 = arith.subf %150, %152 : vector<8x128xf32>
    %154 = vector.broadcast %2 : f32 to vector<8x128xf32>
    %155 = arith.mulf %154, %147 : vector<8x128xf32>
    %156 = arith.addf %143, %155 : vector<8x128xf32>
    %157 = vector.broadcast %5 : f32 to vector<8x128xf32>
    %158 = arith.mulf %157, %145 : vector<8x128xf32>
    %159 = arith.addf %156, %158 : vector<8x128xf32>
    %c32 = arith.constant 32 : index
    %c0_128 = arith.constant 0 : index
    %160 = vector.load %arg5[%c32, %c0_128] : memref<48x128xf32, #tpu.memory_space<vmem>>, vector<8x128xf32>
    tpu.vector_store %arg5[%c32, %c0_128], %153 {strides = array<i32>} : memref<48x128xf32, #tpu.memory_space<vmem>>, vector<8x128xf32>,
    %c40 = arith.constant 40 : index
    %c0_129 = arith.constant 0 : index
    %161 = vector.load %arg5[%c40, %c0_129] : memref<48x128xf32, #tpu.memory_space<vmem>>, vector<8x128xf32>
    tpu.vector_store %arg5[%c40, %c0_129], %159 {strides = array<i32>} : memref<48x128xf32, #tpu.memory_space<vmem>>, vector<8x128xf32>,
    %c0_130 = arith.constant 0 : index
    %c0_131 = arith.constant 0 : index
    %162 = vector.load %arg5[%c0_130, %c0_131] : memref<48x128xf32, #tpu.memory_space<vmem>>, vector<48x128xf32>
    %cst = arith.constant dense<0.000000e+00> : vector<48x48xf32>
    %163 = tpu.matmul %162, %162, %cst {dimension_numbers = #tpu.dot_dimension_numbers<[1], [1], [0], [0], [0, 0, 1, 0], [], []>, precision = #tpu.contract_precision<fp32>} : vector<48x128xf32>, vector<48x128xf32>, vector<48x48xf32> -> vector<48x48xf32>
    %164 = vector.extract_strided_slice %163 {offsets = [0, 0], sizes = [8, 8], strides = [1, 1]} : vector<48x48xf32> to vector<8x8xf32>
    %165 = vector.extract_strided_slice %163 {offsets = [8, 8], sizes = [8, 8], strides = [1, 1]} : vector<48x48xf32> to vector<8x8xf32>
    %166 = vector.extract_strided_slice %163 {offsets = [0, 8], sizes = [8, 8], strides = [1, 1]} : vector<48x48xf32> to vector<8x8xf32>
    %167 = vector.extract_strided_slice %163 {offsets = [8, 0], sizes = [8, 8], strides = [1, 1]} : vector<48x48xf32> to vector<8x8xf32>
    %168 = arith.addf %164, %165 : vector<8x8xf32>
    %169 = arith.subf %167, %166 : vector<8x8xf32>
    %170 = arith.mulf %168, %168 : vector<8x8xf32>
    %171 = arith.mulf %169, %169 : vector<8x8xf32>
    %172 = arith.addf %170, %171 : vector<8x8xf32>
    %173 = vector.shape_cast %172 : vector<8x8xf32> to vector<1x8x8xf32>
    %cst_132 = arith.constant dense<0.000000e+00> : vector<1xf32>
    %174 = vector.multi_reduction <add>, %173, %cst_132 [1, 2] : vector<1x8x8xf32> to vector<1xf32>
    %175 = vector.shape_cast %174 : vector<1xf32> to vector<1x1x1xf32>
    %176 = vector.extract %175[0, 0, 0] : f32 from vector<1x1x1xf32>
    %177 = vector.broadcast %176 : f32 to vector<8x128xf32>
    %c0_133 = arith.constant 0 : index
    %c0_134 = arith.constant 0 : index
    %c0_135 = arith.constant 0 : index
    %178 = vector.load %arg4[%c0_133, %c0_134, %c0_135] : memref<3x8x128xf32, #tpu.memory_space<vmem>>, vector<1x8x128xf32>
    %179 = vector.shape_cast %178 : vector<1x8x128xf32> to vector<8x128xf32>
    %180 = vector.shape_cast %177 : vector<8x128xf32> to vector<1x8x128xf32>
    tpu.vector_store %arg4[%c0_133, %c0_134, %c0_135], %180 {strides = array<i32>} : memref<3x8x128xf32, #tpu.memory_space<vmem>>, vector<1x8x128xf32>,
    %181 = vector.extract_strided_slice %163 {offsets = [16, 16], sizes = [8, 8], strides = [1, 1]} : vector<48x48xf32> to vector<8x8xf32>
    %182 = vector.extract_strided_slice %163 {offsets = [24, 24], sizes = [8, 8], strides = [1, 1]} : vector<48x48xf32> to vector<8x8xf32>
    %183 = vector.extract_strided_slice %163 {offsets = [16, 24], sizes = [8, 8], strides = [1, 1]} : vector<48x48xf32> to vector<8x8xf32>
    %184 = vector.extract_strided_slice %163 {offsets = [24, 16], sizes = [8, 8], strides = [1, 1]} : vector<48x48xf32> to vector<8x8xf32>
    %185 = arith.addf %181, %182 : vector<8x8xf32>
    %186 = arith.subf %184, %183 : vector<8x8xf32>
    %187 = arith.mulf %185, %185 : vector<8x8xf32>
    %188 = arith.mulf %186, %186 : vector<8x8xf32>
    %189 = arith.addf %187, %188 : vector<8x8xf32>
    %190 = vector.shape_cast %189 : vector<8x8xf32> to vector<1x8x8xf32>
    %cst_136 = arith.constant dense<0.000000e+00> : vector<1xf32>
    %191 = vector.multi_reduction <add>, %190, %cst_136 [1, 2] : vector<1x8x8xf32> to vector<1xf32>
    %192 = vector.shape_cast %191 : vector<1xf32> to vector<1x1x1xf32>
    %193 = vector.extract %192[0, 0, 0] : f32 from vector<1x1x1xf32>
    %194 = vector.broadcast %193 : f32 to vector<8x128xf32>
    %c1_137 = arith.constant 1 : index
    %c0_138 = arith.constant 0 : index
    %c0_139 = arith.constant 0 : index
    %195 = vector.load %arg4[%c1_137, %c0_138, %c0_139] : memref<3x8x128xf32, #tpu.memory_space<vmem>>, vector<1x8x128xf32>
    %196 = vector.shape_cast %195 : vector<1x8x128xf32> to vector<8x128xf32>
    %197 = vector.shape_cast %194 : vector<8x128xf32> to vector<1x8x128xf32>
    tpu.vector_store %arg4[%c1_137, %c0_138, %c0_139], %197 {strides = array<i32>} : memref<3x8x128xf32, #tpu.memory_space<vmem>>, vector<1x8x128xf32>,
    %198 = vector.extract_strided_slice %163 {offsets = [32, 32], sizes = [8, 8], strides = [1, 1]} : vector<48x48xf32> to vector<8x8xf32>
    %199 = vector.extract_strided_slice %163 {offsets = [40, 40], sizes = [8, 8], strides = [1, 1]} : vector<48x48xf32> to vector<8x8xf32>
    %200 = vector.extract_strided_slice %163 {offsets = [32, 40], sizes = [8, 8], strides = [1, 1]} : vector<48x48xf32> to vector<8x8xf32>
    %201 = vector.extract_strided_slice %163 {offsets = [40, 32], sizes = [8, 8], strides = [1, 1]} : vector<48x48xf32> to vector<8x8xf32>
    %202 = arith.addf %198, %199 : vector<8x8xf32>
    %203 = arith.subf %201, %200 : vector<8x8xf32>
    %204 = arith.mulf %202, %202 : vector<8x8xf32>
    %205 = arith.mulf %203, %203 : vector<8x8xf32>
    %206 = arith.addf %204, %205 : vector<8x8xf32>
    %207 = vector.shape_cast %206 : vector<8x8xf32> to vector<1x8x8xf32>
    %cst_140 = arith.constant dense<0.000000e+00> : vector<1xf32>
    %208 = vector.multi_reduction <add>, %207, %cst_140 [1, 2] : vector<1x8x8xf32> to vector<1xf32>
    %209 = vector.shape_cast %208 : vector<1xf32> to vector<1x1x1xf32>
    %210 = vector.extract %209[0, 0, 0] : f32 from vector<1x1x1xf32>
    %211 = vector.broadcast %210 : f32 to vector<8x128xf32>
    %c2_141 = arith.constant 2 : index
    %c0_142 = arith.constant 0 : index
    %c0_143 = arith.constant 0 : index
    %212 = vector.load %arg4[%c2_141, %c0_142, %c0_143] : memref<3x8x128xf32, #tpu.memory_space<vmem>>, vector<1x8x128xf32>
    %213 = vector.shape_cast %212 : vector<1x8x128xf32> to vector<8x128xf32>
    %214 = vector.shape_cast %211 : vector<8x128xf32> to vector<1x8x128xf32>
    tpu.vector_store %arg4[%c2_141, %c0_142, %c0_143], %214 {strides = array<i32>} : memref<3x8x128xf32, #tpu.memory_space<vmem>>, vector<1x8x128xf32>,
    return
  }
  func.func @transform_0(%arg0: i32, %arg1: memref<3xf32, #tpu.memory_space<smem>>, %arg2: memref<3xf32, #tpu.memory_space<smem>>) -> (i32, i32, i32, i32, i32) {
    %c0_i32 = arith.constant 0 : i32
    %c0_i32_0 = arith.constant 0 : i32
    %c0_i32_1 = arith.constant 0 : i32
    %c0_i32_2 = arith.constant 0 : i32
    %c0_i32_3 = arith.constant 0 : i32
    return %arg0, %c0_i32, %c0_i32_0, %c0_i32_1, %c0_i32_2 : i32, i32, i32, i32, i32
  }
  func.func @transform_1(%arg0: i32, %arg1: memref<3xf32, #tpu.memory_space<smem>>, %arg2: memref<3xf32, #tpu.memory_space<smem>>) -> (i32, i32, i32) {
    %c0_i32 = arith.constant 0 : i32
    %c0_i32_0 = arith.constant 0 : i32
    %c0_i32_1 = arith.constant 0 : i32
    return %arg0, %c0_i32, %c0_i32_0 : i32, i32, i32
  }
}

module attributes {stable_mosaic.version = 11 : i64} {
  func.func @_concurrence_kernel(%arg0: i32, %arg1: memref<3xf32, #tpu.memory_space<smem>>, %arg2: memref<3xf32, #tpu.memory_space<smem>>, %arg3: memref<3x3x2x8x128xf32, #tpu.memory_space<vmem>>, %arg4: memref<3x8x128xf32, #tpu.memory_space<vmem>>, %arg5: memref<48x128xf32, #tpu.memory_space<vmem>>) attributes {dimension_semantics = [#tpu.dimension_semantics<arbitrary>], iteration_bounds = array<i64: 1>, scalar_prefetch = 2 : i64, scratch_operands = 1 : i64, tpu.core_type = #tpu.core_type<tc>, window_params = [{transform_indices = @transform_0, window_bounds = array<i64: 3, 3, 2, 8, 128>}, {transform_indices = @transform_1, window_bounds = array<i64: 3, 8, 128>}]} {
    %c0 = arith.constant 0 : index
    %0 = memref.load %arg1[%c0] : memref<3xf32, #tpu.memory_space<smem>>
    %c1 = arith.constant 1 : index
    %1 = memref.load %arg1[%c1] : memref<3xf32, #tpu.memory_space<smem>>
    %c2 = arith.constant 2 : index
    %2 = memref.load %arg1[%c2] : memref<3xf32, #tpu.memory_space<smem>>
    %c0_0 = arith.constant 0 : index
    %3 = memref.load %arg2[%c0_0] : memref<3xf32, #tpu.memory_space<smem>>
    %c1_1 = arith.constant 1 : index
    %4 = memref.load %arg2[%c1_1] : memref<3xf32, #tpu.memory_space<smem>>
    %c2_2 = arith.constant 2 : index
    %5 = memref.load %arg2[%c2_2] : memref<3xf32, #tpu.memory_space<smem>>
    %c0_3 = arith.constant 0 : index
    %c0_4 = arith.constant 0 : index
    %c0_5 = arith.constant 0 : index
    %c0_6 = arith.constant 0 : index
    %c0_7 = arith.constant 0 : index
    %6 = vector.load %arg3[%c0_3, %c0_4, %c0_5, %c0_6, %c0_7] : memref<3x3x2x8x128xf32, #tpu.memory_space<vmem>>, vector<1x1x1x8x128xf32>
    %7 = vector.shape_cast %6 : vector<1x1x1x8x128xf32> to vector<8x128xf32>
    %8 = vector.broadcast %0 : f32 to vector<8x128xf32>
    %9 = arith.mulf %8, %7 : vector<8x128xf32>
    %c0_8 = arith.constant 0 : index
    %c0_9 = arith.constant 0 : index
    %c1_10 = arith.constant 1 : index
    %c0_11 = arith.constant 0 : index
    %c0_12 = arith.constant 0 : index
    %10 = vector.load %arg3[%c0_8, %c0_9, %c1_10, %c0_11, %c0_12] : memref<3x3x2x8x128xf32, #tpu.memory_space<vmem>>, vector<1x1x1x8x128xf32>
    %11 = vector.shape_cast %10 : vector<1x1x1x8x128xf32> to vector<8x128xf32>
    %12 = vector.broadcast %3 : f32 to vector<8x128xf32>
    %13 = arith.mulf %12, %11 : vector<8x128xf32>
    %14 = arith.subf %9, %13 : vector<8x128xf32>
    %c0_13 = arith.constant 0 : index
    %c0_14 = arith.constant 0 : index
    %c1_15 = arith.constant 1 : index
    %c0_16 = arith.constant 0 : index
    %c0_17 = arith.constant 0 : index
    %15 = vector.load %arg3[%c0_13, %c0_14, %c1_15, %c0_16, %c0_17] : memref<3x3x2x8x128xf32, #tpu.memory_space<vmem>>, vector<1x1x1x8x128xf32>
    %16 = vector.shape_cast %15 : vector<1x1x1x8x128xf32> to vector<8x128xf32>
    %17 = vector.broadcast %0 : f32 to vector<8x128xf32>
    %18 = arith.mulf %17, %16 : vector<8x128xf32>
    %c0_18 = arith.constant 0 : index
    %c0_19 = arith.constant 0 : index
    %c0_20 = arith.constant 0 : index
    %c0_21 = arith.constant 0 : index
    %c0_22 = arith.constant 0 : index
    %19 = vector.load %arg3[%c0_18, %c0_19, %c0_20, %c0_21, %c0_22] : memref<3x3x2x8x128xf32, #tpu.memory_space<vmem>>, vector<1x1x1x8x128xf32>
    %20 = vector.shape_cast %19 : vector<1x1x1x8x128xf32> to vector<8x128xf32>
    %21 = vector.broadcast %3 : f32 to vector<8x128xf32>
    %22 = arith.mulf %21, %20 : vector<8x128xf32>
    %23 = arith.addf %18, %22 : vector<8x128xf32>
    %c0_23 = arith.constant 0 : index
    %c1_24 = arith.constant 1 : index
    %c0_25 = arith.constant 0 : index
    %c0_26 = arith.constant 0 : index
    %c0_27 = arith.constant 0 : index
    %24 = vector.load %arg3[%c0_23, %c1_24, %c0_25, %c0_26, %c0_27] : memref<3x3x2x8x128xf32, #tpu.memory_space<vmem>>, vector<1x1x1x8x128xf32>
    %25 = vector.shape_cast %24 : vector<1x1x1x8x128xf32> to vector<8x128xf32>
    %c0_28 = arith.constant 0 : index
    %c1_29 = arith.constant 1 : index
    %c1_30 = arith.constant 1 : index
    %c0_31 = arith.constant 0 : index
    %c0_32 = arith.constant 0 : index
    %26 = vector.load %arg3[%c0_28, %c1_29, %c1_30, %c0_31, %c0_32] : memref<3x3x2x8x128xf32, #tpu.memory_space<vmem>>, vector<1x1x1x8x128xf32>
    %27 = vector.shape_cast %26 : vector<1x1x1x8x128xf32> to vector<8x128xf32>
    %28 = vector.broadcast %1 : f32 to vector<8x128xf32>
    %29 = arith.mulf %28, %25 : vector<8x128xf32>
    %30 = arith.addf %14, %29 : vector<8x128xf32>
    %31 = vector.broadcast %4 : f32 to vector<8x128xf32>
    %32 = arith.mulf %31, %27 : vector<8x128xf32>
    %33 = arith.subf %30, %32 : vector<8x128xf32>
    %34 = vector.broadcast %1 : f32 to vector<8x128xf32>
    %35 = arith.mulf %34, %27 : vector<8x128xf32>
    %36 = arith.addf %23, %35 : vector<8x128xf32>
    %37 = vector.broadcast %4 : f32 to vector<8x128xf32>
    %38 = arith.mulf %37, %25 : vector<8x128xf32>
    %39 = arith.addf %36, %38 : vector<8x128xf32>
    %c0_33 = arith.constant 0 : index
    %c2_34 = arith.constant 2 : index
    %c0_35 = arith.constant 0 : index
    %c0_36 = arith.constant 0 : index
    %c0_37 = arith.constant 0 : index
    %40 = vector.load %arg3[%c0_33, %c2_34, %c0_35, %c0_36, %c0_37] : memref<3x3x2x8x128xf32, #tpu.memory_space<vmem>>, vector<1x1x1x8x128xf32>
    %41 = vector.shape_cast %40 : vector<1x1x1x8x128xf32> to vector<8x128xf32>
    %c0_38 = arith.constant 0 : index
    %c2_39 = arith.constant 2 : index
    %c1_40 = arith.constant 1 : index
    %c0_41 = arith.constant 0 : index
    %c0_42 = arith.constant 0 : index
    %42 = vector.load %arg3[%c0_38, %c2_39, %c1_40, %c0_41, %c0_42] : memref<3x3x2x8x128xf32, #tpu.memory_space<vmem>>, vector<1x1x1x8x128xf32>
    %43 = vector.shape_cast %42 : vector<1x1x1x8x128xf32> to vector<8x128xf32>
    %44 = vector.broadcast %2 : f32 to vector<8x128xf32>
    %45 = arith.mulf %44, %41 : vector<8x128xf32>
    %46 = arith.addf %33, %45 : vector<8x128xf32>
    %47 = vector.broadcast %5 : f32 to vector<8x128xf32>
    %48 = arith.mulf %47, %43 : vector<8x128xf32>
    %49 = arith.subf %46, %48 : vector<8x128xf32>
    %50 = vector.broadcast %2 : f32 to vector<8x128xf32>
    %51 = arith.mulf %50, %43 : vector<8x128xf32>
    %52 = arith.addf %39, %51 : vector<8x128xf32>
    %53 = vector.broadcast %5 : f32 to vector<8x128xf32>
    %54 = arith.mulf %53, %41 : vector<8x128xf32>
    %55 = arith.addf %52, %54 : vector<8x128xf32>
    %c0_43 = arith.constant 0 : index
    %c0_44 = arith.constant 0 : index
    %56 = vector.load %arg5[%c0_43, %c0_44] : memref<48x128xf32, #tpu.memory_space<vmem>>, vector<8x128xf32>
    tpu.vector_store %arg5[%c0_43, %c0_44], %49 {strides = array<i32>} : memref<48x128xf32, #tpu.memory_space<vmem>>, vector<8x128xf32>,
    %c8 = arith.constant 8 : index
    %c0_45 = arith.constant 0 : index
    %57 = vector.load %arg5[%c8, %c0_45] : memref<48x128xf32, #tpu.memory_space<vmem>>, vector<8x128xf32>
    tpu.vector_store %arg5[%c8, %c0_45], %55 {strides = array<i32>} : memref<48x128xf32, #tpu.memory_space<vmem>>, vector<8x128xf32>,
    %c1_46 = arith.constant 1 : index
    %c0_47 = arith.constant 0 : index
    %c0_48 = arith.constant 0 : index
    %c0_49 = arith.constant 0 : index
    %c0_50 = arith.constant 0 : index
    %58 = vector.load %arg3[%c1_46, %c0_47, %c0_48, %c0_49, %c0_50] : memref<3x3x2x8x128xf32, #tpu.memory_space<vmem>>, vector<1x1x1x8x128xf32>
    %59 = vector.shape_cast %58 : vector<1x1x1x8x128xf32> to vector<8x128xf32>
    %60 = vector.broadcast %0 : f32 to vector<8x128xf32>
    %61 = arith.mulf %60, %59 : vector<8x128xf32>
    %c1_51 = arith.constant 1 : index
    %c0_52 = arith.constant 0 : index
    %c1_53 = arith.constant 1 : index
    %c0_54 = arith.constant 0 : index
    %c0_55 = arith.constant 0 : index
    %62 = vector.load %arg3[%c1_51, %c0_52, %c1_53, %c0_54, %c0_55] : memref<3x3x2x8x128xf32, #tpu.memory_space<vmem>>, vector<1x1x1x8x128xf32>
    %63 = vector.shape_cast %62 : vector<1x1x1x8x128xf32> to vector<8x128xf32>
    %64 = vector.broadcast %3 : f32 to vector<8x128xf32>
    %65 = arith.mulf %64, %63 : vector<8x128xf32>
    %66 = arith.subf %61, %65 : vector<8x128xf32>
    %c1_56 = arith.constant 1 : index
    %c0_57 = arith.constant 0 : index
    %c1_58 = arith.constant 1 : index
    %c0_59 = arith.constant 0 : index
    %c0_60 = arith.constant 0 : index
    %67 = vector.load %arg3[%c1_56, %c0_57, %c1_58, %c0_59, %c0_60] : memref<3x3x2x8x128xf32, #tpu.memory_space<vmem>>, vector<1x1x1x8x128xf32>
    %68 = vector.shape_cast %67 : vector<1x1x1x8x128xf32> to vector<8x128xf32>
    %69 = vector.broadcast %0 : f32 to vector<8x128xf32>
    %70 = arith.mulf %69, %68 : vector<8x128xf32>
    %c1_61 = arith.constant 1 : index
    %c0_62 = arith.constant 0 : index
    %c0_63 = arith.constant 0 : index
    %c0_64 = arith.constant 0 : index
    %c0_65 = arith.constant 0 : index
    %71 = vector.load %arg3[%c1_61, %c0_62, %c0_63, %c0_64, %c0_65] : memref<3x3x2x8x128xf32, #tpu.memory_space<vmem>>, vector<1x1x1x8x128xf32>
    %72 = vector.shape_cast %71 : vector<1x1x1x8x128xf32> to vector<8x128xf32>
    %73 = vector.broadcast %3 : f32 to vector<8x128xf32>
    %74 = arith.mulf %73, %72 : vector<8x128xf32>
    %75 = arith.addf %70, %74 : vector<8x128xf32>
    %c1_66 = arith.constant 1 : index
    %c1_67 = arith.constant 1 : index
    %c0_68 = arith.constant 0 : index
    %c0_69 = arith.constant 0 : index
    %c0_70 = arith.constant 0 : index
    %76 = vector.load %arg3[%c1_66, %c1_67, %c0_68, %c0_69, %c0_70] : memref<3x3x2x8x128xf32, #tpu.memory_space<vmem>>, vector<1x1x1x8x128xf32>
    %77 = vector.shape_cast %76 : vector<1x1x1x8x128xf32> to vector<8x128xf32>
    %c1_71 = arith.constant 1 : index
    %c1_72 = arith.constant 1 : index
    %c1_73 = arith.constant 1 : index
    %c0_74 = arith.constant 0 : index
    %c0_75 = arith.constant 0 : index
    %78 = vector.load %arg3[%c1_71, %c1_72, %c1_73, %c0_74, %c0_75] : memref<3x3x2x8x128xf32, #tpu.memory_space<vmem>>, vector<1x1x1x8x128xf32>
    %79 = vector.shape_cast %78 : vector<1x1x1x8x128xf32> to vector<8x128xf32>
    %80 = vector.broadcast %1 : f32 to vector<8x128xf32>
    %81 = arith.mulf %80, %77 : vector<8x128xf32>
    %82 = arith.addf %66, %81 : vector<8x128xf32>
    %83 = vector.broadcast %4 : f32 to vector<8x128xf32>
    %84 = arith.mulf %83, %79 : vector<8x128xf32>
    %85 = arith.subf %82, %84 : vector<8x128xf32>
    %86 = vector.broadcast %1 : f32 to vector<8x128xf32>
    %87 = arith.mulf %86, %79 : vector<8x128xf32>
    %88 = arith.addf %75, %87 : vector<8x128xf32>
    %89 = vector.broadcast %4 : f32 to vector<8x128xf32>
    %90 = arith.mulf %89, %77 : vector<8x128xf32>
    %91 = arith.addf %88, %90 : vector<8x128xf32>
    %c1_76 = arith.constant 1 : index
    %c2_77 = arith.constant 2 : index
    %c0_78 = arith.constant 0 : index
    %c0_79 = arith.constant 0 : index
    %c0_80 = arith.constant 0 : index
    %92 = vector.load %arg3[%c1_76, %c2_77, %c0_78, %c0_79, %c0_80] : memref<3x3x2x8x128xf32, #tpu.memory_space<vmem>>, vector<1x1x1x8x128xf32>
    %93 = vector.shape_cast %92 : vector<1x1x1x8x128xf32> to vector<8x128xf32>
    %c1_81 = arith.constant 1 : index
    %c2_82 = arith.constant 2 : index
    %c1_83 = arith.constant 1 : index
    %c0_84 = arith.constant 0 : index
    %c0_85 = arith.constant 0 : index
    %94 = vector.load %arg3[%c1_81, %c2_82, %c1_83, %c0_84, %c0_85] : memref<3x3x2x8x128xf32, #tpu.memory_space<vmem>>, vector<1x1x1x8x128xf32>
    %95 = vector.shape_cast %94 : vector<1x1x1x8x128xf32> to vector<8x128xf32>
    %96 = vector.broadcast %2 : f32 to vector<8x128xf32>
    %97 = arith.mulf %96, %93 : vector<8x128xf32>
    %98 = arith.addf %85, %97 : vector<8x128xf32>
    %99 = vector.broadcast %5 : f32 to vector<8x128xf32>
    %100 = arith.mulf %99, %95 : vector<8x128xf32>
    %101 = arith.subf %98, %100 : vector<8x128xf32>
    %102 = vector.broadcast %2 : f32 to vector<8x128xf32>
    %103 = arith.mulf %102, %95 : vector<8x128xf32>
    %104 = arith.addf %91, %103 : vector<8x128xf32>
    %105 = vector.broadcast %5 : f32 to vector<8x128xf32>
    %106 = arith.mulf %105, %93 : vector<8x128xf32>
    %107 = arith.addf %104, %106 : vector<8x128xf32>
    %c16 = arith.constant 16 : index
    %c0_86 = arith.constant 0 : index
    %108 = vector.load %arg5[%c16, %c0_86] : memref<48x128xf32, #tpu.memory_space<vmem>>, vector<8x128xf32>
    tpu.vector_store %arg5[%c16, %c0_86], %101 {strides = array<i32>} : memref<48x128xf32, #tpu.memory_space<vmem>>, vector<8x128xf32>,
    %c24 = arith.constant 24 : index
    %c0_87 = arith.constant 0 : index
    %109 = vector.load %arg5[%c24, %c0_87] : memref<48x128xf32, #tpu.memory_space<vmem>>, vector<8x128xf32>
    tpu.vector_store %arg5[%c24, %c0_87], %107 {strides = array<i32>} : memref<48x128xf32, #tpu.memory_space<vmem>>, vector<8x128xf32>,
    %c2_88 = arith.constant 2 : index
    %c0_89 = arith.constant 0 : index
    %c0_90 = arith.constant 0 : index
    %c0_91 = arith.constant 0 : index
    %c0_92 = arith.constant 0 : index
    %110 = vector.load %arg3[%c2_88, %c0_89, %c0_90, %c0_91, %c0_92] : memref<3x3x2x8x128xf32, #tpu.memory_space<vmem>>, vector<1x1x1x8x128xf32>
    %111 = vector.shape_cast %110 : vector<1x1x1x8x128xf32> to vector<8x128xf32>
    %112 = vector.broadcast %0 : f32 to vector<8x128xf32>
    %113 = arith.mulf %112, %111 : vector<8x128xf32>
    %c2_93 = arith.constant 2 : index
    %c0_94 = arith.constant 0 : index
    %c1_95 = arith.constant 1 : index
    %c0_96 = arith.constant 0 : index
    %c0_97 = arith.constant 0 : index
    %114 = vector.load %arg3[%c2_93, %c0_94, %c1_95, %c0_96, %c0_97] : memref<3x3x2x8x128xf32, #tpu.memory_space<vmem>>, vector<1x1x1x8x128xf32>
    %115 = vector.shape_cast %114 : vector<1x1x1x8x128xf32> to vector<8x128xf32>
    %116 = vector.broadcast %3 : f32 to vector<8x128xf32>
    %117 = arith.mulf %116, %115 : vector<8x128xf32>
    %118 = arith.subf %113, %117 : vector<8x128xf32>
    %c2_98 = arith.constant 2 : index
    %c0_99 = arith.constant 0 : index
    %c1_100 = arith.constant 1 : index
    %c0_101 = arith.constant 0 : index
    %c0_102 = arith.constant 0 : index
    %119 = vector.load %arg3[%c2_98, %c0_99, %c1_100, %c0_101, %c0_102] : memref<3x3x2x8x128xf32, #tpu.memory_space<vmem>>, vector<1x1x1x8x128xf32>
    %120 = vector.shape_cast %119 : vector<1x1x1x8x128xf32> to vector<8x128xf32>
    %121 = vector.broadcast %0 : f32 to vector<8x128xf32>
    %122 = arith.mulf %121, %120 : vector<8x128xf32>
    %c2_103 = arith.constant 2 : index
    %c0_104 = arith.constant 0 : index
    %c0_105 = arith.constant 0 : index
    %c0_106 = arith.constant 0 : index
    %c0_107 = arith.constant 0 : index
    %123 = vector.load %arg3[%c2_103, %c0_104, %c0_105, %c0_106, %c0_107] : memref<3x3x2x8x128xf32, #tpu.memory_space<vmem>>, vector<1x1x1x8x128xf32>
    %124 = vector.shape_cast %123 : vector<1x1x1x8x128xf32> to vector<8x128xf32>
    %125 = vector.broadcast %3 : f32 to vector<8x128xf32>
    %126 = arith.mulf %125, %124 : vector<8x128xf32>
    %127 = arith.addf %122, %126 : vector<8x128xf32>
    %c2_108 = arith.constant 2 : index
    %c1_109 = arith.constant 1 : index
    %c0_110 = arith.constant 0 : index
    %c0_111 = arith.constant 0 : index
    %c0_112 = arith.constant 0 : index
    %128 = vector.load %arg3[%c2_108, %c1_109, %c0_110, %c0_111, %c0_112] : memref<3x3x2x8x128xf32, #tpu.memory_space<vmem>>, vector<1x1x1x8x128xf32>
    %129 = vector.shape_cast %128 : vector<1x1x1x8x128xf32> to vector<8x128xf32>
    %c2_113 = arith.constant 2 : index
    %c1_114 = arith.constant 1 : index
    %c1_115 = arith.constant 1 : index
    %c0_116 = arith.constant 0 : index
    %c0_117 = arith.constant 0 : index
    %130 = vector.load %arg3[%c2_113, %c1_114, %c1_115, %c0_116, %c0_117] : memref<3x3x2x8x128xf32, #tpu.memory_space<vmem>>, vector<1x1x1x8x128xf32>
    %131 = vector.shape_cast %130 : vector<1x1x1x8x128xf32> to vector<8x128xf32>
    %132 = vector.broadcast %1 : f32 to vector<8x128xf32>
    %133 = arith.mulf %132, %129 : vector<8x128xf32>
    %134 = arith.addf %118, %133 : vector<8x128xf32>
    %135 = vector.broadcast %4 : f32 to vector<8x128xf32>
    %136 = arith.mulf %135, %131 : vector<8x128xf32>
    %137 = arith.subf %134, %136 : vector<8x128xf32>
    %138 = vector.broadcast %1 : f32 to vector<8x128xf32>
    %139 = arith.mulf %138, %131 : vector<8x128xf32>
    %140 = arith.addf %127, %139 : vector<8x128xf32>
    %141 = vector.broadcast %4 : f32 to vector<8x128xf32>
    %142 = arith.mulf %141, %129 : vector<8x128xf32>
    %143 = arith.addf %140, %142 : vector<8x128xf32>
    %c2_118 = arith.constant 2 : index
    %c2_119 = arith.constant 2 : index
    %c0_120 = arith.constant 0 : index
    %c0_121 = arith.constant 0 : index
    %c0_122 = arith.constant 0 : index
    %144 = vector.load %arg3[%c2_118, %c2_119, %c0_120, %c0_121, %c0_122] : memref<3x3x2x8x128xf32, #tpu.memory_space<vmem>>, vector<1x1x1x8x128xf32>
    %145 = vector.shape_cast %144 : vector<1x1x1x8x128xf32> to vector<8x128xf32>
    %c2_123 = arith.constant 2 : index
    %c2_124 = arith.constant 2 : index
    %c1_125 = arith.constant 1 : index
    %c0_126 = arith.constant 0 : index
    %c0_127 = arith.constant 0 : index
    %146 = vector.load %arg3[%c2_123, %c2_124, %c1_125, %c0_126, %c0_127] : memref<3x3x2x8x128xf32, #tpu.memory_space<vmem>>, vector<1x1x1x8x128xf32>
    %147 = vector.shape_cast %146 : vector<1x1x1x8x128xf32> to vector<8x128xf32>
    %148 = vector.broadcast %2 : f32 to vector<8x128xf32>
    %149 = arith.mulf %148, %145 : vector<8x128xf32>
    %150 = arith.addf %137, %149 : vector<8x128xf32>
    %151 = vector.broadcast %5 : f32 to vector<8x128xf32>
    %152 = arith.mulf %151, %147 : vector<8x128xf32>
    %153 = arith.subf %150, %152 : vector<8x128xf32>
    %154 = vector.broadcast %2 : f32 to vector<8x128xf32>
    %155 = arith.mulf %154, %147 : vector<8x128xf32>
    %156 = arith.addf %143, %155 : vector<8x128xf32>
    %157 = vector.broadcast %5 : f32 to vector<8x128xf32>
    %158 = arith.mulf %157, %145 : vector<8x128xf32>
    %159 = arith.addf %156, %158 : vector<8x128xf32>
    %c32 = arith.constant 32 : index
    %c0_128 = arith.constant 0 : index
    %160 = vector.load %arg5[%c32, %c0_128] : memref<48x128xf32, #tpu.memory_space<vmem>>, vector<8x128xf32>
    tpu.vector_store %arg5[%c32, %c0_128], %153 {strides = array<i32>} : memref<48x128xf32, #tpu.memory_space<vmem>>, vector<8x128xf32>,
    %c40 = arith.constant 40 : index
    %c0_129 = arith.constant 0 : index
    %161 = vector.load %arg5[%c40, %c0_129] : memref<48x128xf32, #tpu.memory_space<vmem>>, vector<8x128xf32>
    tpu.vector_store %arg5[%c40, %c0_129], %159 {strides = array<i32>} : memref<48x128xf32, #tpu.memory_space<vmem>>, vector<8x128xf32>,
    %c0_130 = arith.constant 0 : index
    %c0_131 = arith.constant 0 : index
    %162 = vector.load %arg5[%c0_130, %c0_131] : memref<48x128xf32, #tpu.memory_space<vmem>>, vector<48x128xf32>
    %cst = arith.constant dense<0.000000e+00> : vector<48x48xf32>
    %163 = tpu.matmul %162, %162, %cst {dimension_numbers = #tpu.dot_dimension_numbers<[1], [1], [0], [0], [0, 0, 1, 0], [], []>, precision = #tpu.contract_precision<fp32>} : vector<48x128xf32>, vector<48x128xf32>, vector<48x48xf32> -> vector<48x48xf32>
    %164 = vector.extract_strided_slice %163 {offsets = [0, 0], sizes = [8, 8], strides = [1, 1]} : vector<48x48xf32> to vector<8x8xf32>
    %165 = vector.extract_strided_slice %163 {offsets = [8, 8], sizes = [8, 8], strides = [1, 1]} : vector<48x48xf32> to vector<8x8xf32>
    %166 = vector.extract_strided_slice %163 {offsets = [0, 8], sizes = [8, 8], strides = [1, 1]} : vector<48x48xf32> to vector<8x8xf32>
    %167 = vector.extract_strided_slice %163 {offsets = [8, 0], sizes = [8, 8], strides = [1, 1]} : vector<48x48xf32> to vector<8x8xf32>
    %168 = arith.addf %164, %165 : vector<8x8xf32>
    %169 = arith.subf %167, %166 : vector<8x8xf32>
    %170 = arith.mulf %168, %168 : vector<8x8xf32>
    %171 = arith.mulf %169, %169 : vector<8x8xf32>
    %172 = arith.addf %170, %171 : vector<8x8xf32>
    %173 = vector.shape_cast %172 : vector<8x8xf32> to vector<1x8x8xf32>
    %cst_132 = arith.constant dense<0.000000e+00> : vector<1xf32>
    %174 = vector.multi_reduction <add>, %173, %cst_132 [1, 2] : vector<1x8x8xf32> to vector<1xf32>
    %175 = vector.shape_cast %174 : vector<1xf32> to vector<1x1x1xf32>
    %176 = vector.extract %175[0, 0, 0] : f32 from vector<1x1x1xf32>
    %177 = vector.broadcast %176 : f32 to vector<8x128xf32>
    %c0_133 = arith.constant 0 : index
    %c0_134 = arith.constant 0 : index
    %c0_135 = arith.constant 0 : index
    %178 = vector.load %arg4[%c0_133, %c0_134, %c0_135] : memref<3x8x128xf32, #tpu.memory_space<vmem>>, vector<1x8x128xf32>
    %179 = vector.shape_cast %178 : vector<1x8x128xf32> to vector<8x128xf32>
    %180 = vector.shape_cast %177 : vector<8x128xf32> to vector<1x8x128xf32>
    tpu.vector_store %arg4[%c0_133, %c0_134, %c0_135], %180 {strides = array<i32>} : memref<3x8x128xf32, #tpu.memory_space<vmem>>, vector<1x8x128xf32>,
    %181 = vector.extract_strided_slice %163 {offsets = [16, 16], sizes = [8, 8], strides = [1, 1]} : vector<48x48xf32> to vector<8x8xf32>
    %182 = vector.extract_strided_slice %163 {offsets = [24, 24], sizes = [8, 8], strides = [1, 1]} : vector<48x48xf32> to vector<8x8xf32>
    %183 = vector.extract_strided_slice %163 {offsets = [16, 24], sizes = [8, 8], strides = [1, 1]} : vector<48x48xf32> to vector<8x8xf32>
    %184 = vector.extract_strided_slice %163 {offsets = [24, 16], sizes = [8, 8], strides = [1, 1]} : vector<48x48xf32> to vector<8x8xf32>
    %185 = arith.addf %181, %182 : vector<8x8xf32>
    %186 = arith.subf %184, %183 : vector<8x8xf32>
    %187 = arith.mulf %185, %185 : vector<8x8xf32>
    %188 = arith.mulf %186, %186 : vector<8x8xf32>
    %189 = arith.addf %187, %188 : vector<8x8xf32>
    %190 = vector.shape_cast %189 : vector<8x8xf32> to vector<1x8x8xf32>
    %cst_136 = arith.constant dense<0.000000e+00> : vector<1xf32>
    %191 = vector.multi_reduction <add>, %190, %cst_136 [1, 2] : vector<1x8x8xf32> to vector<1xf32>
    %192 = vector.shape_cast %191 : vector<1xf32> to vector<1x1x1xf32>
    %193 = vector.extract %192[0, 0, 0] : f32 from vector<1x1x1xf32>
    %194 = vector.broadcast %193 : f32 to vector<8x128xf32>
    %c1_137 = arith.constant 1 : index
    %c0_138 = arith.constant 0 : index
    %c0_139 = arith.constant 0 : index
    %195 = vector.load %arg4[%c1_137, %c0_138, %c0_139] : memref<3x8x128xf32, #tpu.memory_space<vmem>>, vector<1x8x128xf32>
    %196 = vector.shape_cast %195 : vector<1x8x128xf32> to vector<8x128xf32>
    %197 = vector.shape_cast %194 : vector<8x128xf32> to vector<1x8x128xf32>
    tpu.vector_store %arg4[%c1_137, %c0_138, %c0_139], %197 {strides = array<i32>} : memref<3x8x128xf32, #tpu.memory_space<vmem>>, vector<1x8x128xf32>,
    %198 = vector.extract_strided_slice %163 {offsets = [32, 32], sizes = [8, 8], strides = [1, 1]} : vector<48x48xf32> to vector<8x8xf32>
    %199 = vector.extract_strided_slice %163 {offsets = [40, 40], sizes = [8, 8], strides = [1, 1]} : vector<48x48xf32> to vector<8x8xf32>
    %200 = vector.extract_strided_slice %163 {offsets = [32, 40], sizes = [8, 8], strides = [1, 1]} : vector<48x48xf32> to vector<8x8xf32>
    %201 = vector.extract_strided_slice %163 {offsets = [40, 32], sizes = [8, 8], strides = [1, 1]} : vector<48x48xf32> to vector<8x8xf32>
    %202 = arith.addf %198, %199 : vector<8x8xf32>
    %203 = arith.subf %201, %200 : vector<8x8xf32>
    %204 = arith.mulf %202, %202 : vector<8x8xf32>
    %205 = arith.mulf %203, %203 : vector<8x8xf32>
    %206 = arith.addf %204, %205 : vector<8x8xf32>
    %207 = vector.shape_cast %206 : vector<8x8xf32> to vector<1x8x8xf32>
    %cst_140 = arith.constant dense<0.000000e+00> : vector<1xf32>
    %208 = vector.multi_reduction <add>, %207, %cst_140 [1, 2] : vector<1x8x8xf32> to vector<1xf32>
    %209 = vector.shape_cast %208 : vector<1xf32> to vector<1x1x1xf32>
    %210 = vector.extract %209[0, 0, 0] : f32 from vector<1x1x1xf32>
    %211 = vector.broadcast %210 : f32 to vector<8x128xf32>
    %c2_141 = arith.constant 2 : index
    %c0_142 = arith.constant 0 : index
    %c0_143 = arith.constant 0 : index
    %212 = vector.load %arg4[%c2_141, %c0_142, %c0_143] : memref<3x8x128xf32, #tpu.memory_space<vmem>>, vector<1x8x128xf32>
    %213 = vector.shape_cast %212 : vector<1x8x128xf32> to vector<8x128xf32>
    %214 = vector.shape_cast %211 : vector<8x128xf32> to vector<1x8x128xf32>
    tpu.vector_store %arg4[%c2_141, %c0_142, %c0_143], %214 {strides = array<i32>} : memref<3x8x128xf32, #tpu.memory_space<vmem>>, vector<1x8x128xf32>,
    return
  }
  func.func @transform_0(%arg0: i32, %arg1: memref<3xf32, #tpu.memory_space<smem>>, %arg2: memref<3xf32, #tpu.memory_space<smem>>) -> (i32, i32, i32, i32, i32) {
    %c0_i32 = arith.constant 0 : i32
    %c0_i32_0 = arith.constant 0 : i32
    %c0_i32_1 = arith.constant 0 : i32
    %c0_i32_2 = arith.constant 0 : i32
    %c0_i32_3 = arith.constant 0 : i32
    return %arg0, %c0_i32, %c0_i32_0, %c0_i32_1, %c0_i32_2 : i32, i32, i32, i32, i32
  }
  func.func @transform_1(%arg0: i32, %arg1: memref<3xf32, #tpu.memory_space<smem>>, %arg2: memref<3xf32, #tpu.memory_space<smem>>) -> (i32, i32, i32) {
    %c0_i32 = arith.constant 0 : i32
    %c0_i32_0 = arith.constant 0 : i32
    %c0_i32_1 = arith.constant 0 : i32
    return %arg0, %c0_i32, %c0_i32_0 : i32, i32, i32
  }
}

</mosaic_0001>

<bundles_post_ra>
// kernel: tpu_custom_call.1
= control target key start
LH: loop header
LB: loop body
LE: loop exit
PB: predicated region body
PF: predicated region fallthrough
CT: control target
= control target key end

     0   :  { %s1586_s0 = inlined_call_operand.hbm [shape: f32[3], index: 0, kind: input, shape index: {}]   ;;  %s1587_s2 = inlined_call_operand.hbm [shape: f32[3,3,2,8,128], index: 2, kind: input, shape index: {}]   ;;  %s1588_s3 = inlined_call_operand.hbm [shape: f32[3,8,128], index: 3, kind: output, shape index: {}]   ;;  %s1589_s1 = inlined_call_operand.vmem [shape: f32[3], index: 1, kind: input, shape index: {}]  }
   0x1   :  { %s1306_s14 = scalar_lea.hbm %s1586_s0, 16 }
   0x2   :  { %p1307_p0 = scmp.ne.s32.totalorder %s1586_s0, %s1306_s14  ;;  %p1310_p1 = scmp.lt.u32.totalorder %s1306_s14, %s1586_s0 }
   0x4   :  { %p1312_p2 = pnand %p1310_p1, %p1307_p0 }
   0x6   :  { %1315 = shalt.err (!%p1312_p2)  }
   0x7   :  { %s1378_s19 = smov [#allocation4]   ;;  %s10_s24 = sshll.u32 %s1589_s1, 4  ;;  %s11_s24 = int_to_ptr.vmem [resolvable:$true] %s10_s24 }
   0x8   :  { %9 = dma.hbm_to_smem %s1586_s0, 16, %s1378_s19, [#allocation3] }
   0x9   :  { %s1316_s25 = scalar_lea.vmem %s11_s24, 16  ;;  %p1321_p4 = scmp.lt.s32.totalorder %s11_s24, %s11_s24 }
   0xa   :  { %p1317_p3 = scmp.ne.s32.totalorder %s11_s24, %s1316_s25  ;;  %p1322_p5 = scmp.lt.s32.totalorder %s1316_s25, %s1316_s25 }
   0xc   :  { %p1323_p6 = por %p1322_p5, %p1321_p4 }
   0xe   :  { %p1324_p7 = pnand %p1323_p6, %p1317_p3 }
  0x10   :  { %1327 = shalt.err (!%p1324_p7)  }
  0x11   :  { %s1379_s26 = smov [#allocation5]  }
  0x12   :  { %13 = dma.vmem_to_smem %s11_s24, 16, %s1379_s26, [#allocation3] }
  0x13   :  { %1372 = dma.done.wait [#allocation3], 32 }
  0x14   :  { %1373 = vsyncadd [#allocation3], 4294967264 }
  0x15   :  { %15 = sfence }
  0x16   :  { %16 = vsyncpa [#allocation7], 0 }
  0x17   :  { %17 = vsyncpa [#allocation8], 0  ;;  %s1380_s0 = smov [#allocation6]   ;;  %s1328_s29 = scalar_lea.hbm %s1587_s2, 2304 }
  0x18   :  { %s23_s27 = sshll.u32 %s1380_s0, 4  ;;  %p1329_p8 = scmp.ne.s32.totalorder %s1587_s2, %s1328_s29  ;;  %s24_s27 = int_to_ptr.vmem [resolvable:$true] %s23_s27 }
  0x19   :  { %p1332_p9 = scmp.lt.u32.totalorder %s1328_s29, %s1587_s2 }
  0x1b   :  { %p1334_p10 = pnand %p1332_p9, %p1329_p8 }
  0x1d   :  { %1337 = shalt.err (!%p1334_p10)
}
  0x1e   :  { %s1338_s7 = scalar_lea.vmem %s24_s27, 2304  ;;  %p1343_p12 = scmp.lt.s32.totalorder %s24_s27, %s24_s27 }
  0x1f   :  { %p1339_p11 = scmp.ne.s32.totalorder %s24_s27, %s1338_s7  ;;  %p1344_p13 = scmp.lt.s32.totalorder %s1338_s7, %s1338_s7 }
  0x21   :  { %p1345_p0 = por %p1344_p13, %p1343_p12 }
  0x23   :  { %p1346_p1 = pnand %p1345_p0, %p1339_p11 }
  0x25   :  { %1349 = shalt.err (!%p1346_p1)
}
  0x26   :  { %s1381_s8 = smov 128   ;;  %s1382_s9 = smov 8  }
  0x27   :  { %29 = dma.hbm_to_vmem [thread:$0]  %s1587_s2, 2304, %s24_s27, [#allocation7], %s1381_s8, %s1381_s8, %s1382_s9  }
  0x28   :  { %1374 = dma.done.wait [#allocation7], 2304  }
  0x29   :  { %1375 = vsyncadd [#allocation7], 4294964992  ;;  %s33_s12 = sld [smem:[#allocation4]]  ;;  %s987_s13 = sld [smem:[#allocation4 + $0x1]]  ;;  %v39_v0 = vld [vmem:[#allocation6] sm:$0xff]  ;;  %v43_v2 = vld [vmem:[#allocation6 + $0x8] sm:$0xff] }
  0x2a   :  { %s988_s14 = sld [smem:[#allocation4 + $0x2]]  ;;  %s36_s15 = sld [smem:[#allocation5]]  ;;  %v51_v3 = vld [vmem:[#allocation6 + $0x10] sm:$0xff]  ;;  %v53_v8 = vld [vmem:[#allocation6 + $0x18] sm:$0xff]  ;;  %v65_v10 = vld [vmem:[#allocation6 + $0x20] sm:$0xff]  ;;  %vm897_vm0 = vcmask 64512  }
  0x2b   :  { %s989_s16 = sld [smem:[#allocation5 + $0x1]]  ;;  %s990_s17 = sld [smem:[#allocation5 + $0x2]]  ;;  %v67_v15 = vld [vmem:[#allocation6 + $0x28] sm:$0xff]  ;;  %v81_v16 = vld [vmem:[#allocation6 + $0x30] sm:$0xff]  ;;  %v84_v17 = vld [vmem:[#allocation6 + $0x38] sm:$0xff] }
  0x2c   :  { %v91_v26 = vld [vmem:[#allocation6 + $0x40] sm:$0xff]  ;;  %v93_v27 = vld [vmem:[#allocation6 + $0x48] sm:$0xff]  ;;  %v103_v36 = vld [vmem:[#allocation6 + $0x50] sm:$0xff]  ;;  %s1383_s2 = smov 120   ;;  %s1384_s18 = smov 112  }
  0x2d   :  { %v105_v37 = vld [vmem:[#allocation6 + $0x58] sm:$0xff]  ;;  %v117_v46 = vld [vmem:[#allocation6 + $0x60] sm:$0xff]  ;;  %v120_v47 = vld [vmem:[#allocation6 + $0x68] sm:$0xff]  ;;  %s1385_s19 = smov 96   ;;  %s1386_s22 = smov [#allocation9]  }
  0x2e   :  { %v127_v56 = vld [vmem:[#allocation6 + $0x70] sm:$0xff]  ;;  %s975_s23 = sshll.u32 %s1386_s22, 4  ;;  %s976_s23 = int_to_ptr.vmem [resolvable:$true] %s975_s23 }
  0x2f   :  { %v40_v1 = vstv %s33_s12  ;;  %v1437_v4 = vstv %s987_s13  ;;  %s1350_s25 = scalar_lea.vmem %s976_s23, 384  ;;  %p1355_p3 = scmp.lt.s32.totalorder %s976_s23, %s976_s23 }
  0x30   :  { %v41_v5 = vmul.f32 %v40_v1, %v39_v0  ;;  %v44_v6 = vstv %s36_s15  ;;  %v47_v7 = vmul.f32 %v43_v2, %v40_v1  ;;  %v55_v9 = vmul.f32 %v1437_v4, %v51_v3  ;;  %p1351_p2 = scmp.ne.s32.totalorder %s976_s23, %s1350_s25  ;;  %p1356_p4 = scmp.lt.s32.totalorder %s1350_s25, %s1350_s25 }
  0x31   :  { %v45_v11 = vmul.f32 %v44_v6, %v43_v2  ;;  %v48_v12 = vmul.f32 %v44_v6, %v39_v0  ;;  %v1440_v13 = vstv %s989_s16  ;;  %v60_v14 = vmul.f32 %v1437_v4, %v53_v8  ;;  %v129_v2 = vld [vmem:[#allocation6 + $0x78] sm:$0xff] }
  0x32   :  { %v58_v18 = vmul.f32 %v1440_v13, %v53_v8  ;;  %v62_v19 = vmul.f32 %v1440_v13, %v51_v3  ;;  %v1445_v20 = vstv %s988_s14  ;;  %v1447_v21 = vstv %s990_s17  ;;  %p1357_p5 = por %p1356_p4, %p1355_p3 }
  0x33   :  { %v46_v22 = vsub.f32 %v41_v5, %v45_v11  ;;  %v49_v23 = vadd.f32 %v48_v12, %v47_v7  ;;  %v69_v24 = vmul.f32 %v1445_v20, %v65_v10  ;;  %v72_v25 = vmul.f32 %v1447_v21, %v67_v15 }
  0x34   :  { %v74_v28 = vmul.f32 %v1445_v20, %v67_v15  ;;  %v76_v29 = vmul.f32 %v1447_v21, %v65_v10  ;;  %v82_v30 = vmul.f32 %v81_v16, %v40_v1  ;;  %v85_v31 = vmul.f32 %v84_v17, %v44_v6  ;;  %v141_v15 = vld [vmem:[#allocation6 + $0x88] sm:$0xff]  ;;  %p1358_p6 = pnand %p1357_p5, %p1351_p2 }
  0x35   :  { %v56_v32 = vadd.f32 %v55_v9, %v46_v22  ;;  %v61_v33 = vadd.f32 %v60_v14, %v49_v23  ;;  %v87_v34 = vmul.f32 %v84_v17, %v40_v1  ;;  %v88_v35 = vmul.f32 %v81_v16, %v44_v6  ;;  %v139_v9 = vld [vmem:[#allocation6 + $0x80] sm:$0xff] }
  0x36   :  { %v86_v38 = vsub.f32 %v82_v30, %v85_v31  ;;  %v94_v39 = vmul.f32 %v91_v26, %v1437_v4  ;;  %v96_v40 = vmul.f32 %v93_v27, %v1440_v13  ;;  %v98_v41 = vmul.f32 %v93_v27, %v1437_v4 }
  0x37   :  { %v59_v42 = vsub.f32 %v56_v32, %v58_v18  ;;  %v63_v43 = vadd.f32 %v62_v19, %v61_v33  ;;  %v89_v44 = vadd.f32 %v88_v35, %v87_v34  ;;  %v100_v45 = vmul.f32 %v91_v26, %v1440_v13 }
  0x38   :  { %v95_v48 = vadd.f32 %v94_v39, %v86_v38  ;;  %v106_v49 = vmul.f32 %v103_v36, %v1445_v20  ;;  %v108_v50 = vmul.f32 %v105_v37, %v1447_v21  ;;  %v110_v51 = vmul.f32 %v105_v37, %v1445_v20 }
  0x39   :  { %v70_v52 = vadd.f32 %v69_v24, %v59_v42  ;;  %v75_v53 = vadd.f32 %v74_v28, %v63_v43  ;;  %v99_v54 = vadd.f32 %v98_v41, %v89_v44  ;;  %v112_v55 = vmul.f32 %v103_v36, %v1447_v21 }
  0x3a   :  { %v97_v57 = vsub.f32 %v95_v48, %v96_v40  ;;  %v118_v58 = vmul.f32 %v117_v46, %v40_v1  ;;  %v121_v59 = vmul.f32 %v120_v47, %v44_v6  ;;  %v123_v60 = vmul.f32 %v120_v47, %v40_v1 }
  0x3b   :  { %v73_v61 = vsub.f32 %v70_v52, %v72_v25  ;;  %v77_v62 = vadd.f32 %v76_v29, %v75_v53  ;;  %v101_v63 = vadd.f32 %v100_v45, %v99_v54  ;;  %v124_v0 = vmul.f32 %v117_v46, %v44_v6 }
  0x3c   :  { %v107_v3 = vadd.f32 %v106_v49, %v97_v57  ;;  %v122_v5 = vsub.f32 %v118_v58, %v121_v59  ;;  %v130_v7 = vmul.f32 %v127_v56, %v1437_v4  ;;  %v132_v8 = vmul.f32 %v129_v2, %v1440_v13 }
  0x3d   :  { %v1463_v10 = vand.u32 4294901760, %v73_v61  ;;  %v1465_v11 = vand.u32 4294901760, %v77_v62  ;;  %v111_v12 = vadd.f32 %v110_v51, %v101_v63  ;;  %v125_v14 = vadd.f32 %v124_v0, %v123_v60 }
  0x3e   :  { %v109_v1 = vsub.f32 %v107_v3, %v108_v50  ;;  %v131_v16 = vadd.f32 %v130_v7, %v122_v5  ;;  %v134_v17 = vmul.f32 %v129_v2, %v1437_v4  ;;  %v136_v6 = vmul.f32 %v127_v56, %v1440_v13 }
  0x3f   :  { %v1471_v18 = vpack.c.bf16 %v1465_v11, %v1463_v10  ;;  %v113_v19 = vadd.f32 %v112_v55, %v111_v12  ;;  %v142_v22 = vmul.f32 %v139_v9, %v1445_v20  ;;  %v144_v23 = vmul.f32 %v141_v15, %v1447_v21 }
  0x40   :  { %v1475_v24 = vand.u32 4294901760, %v109_v1  ;;  %v133_v25 = vsub.f32 %v131_v16, %v132_v8  ;;  %v135_v26 = vadd.f32 %v134_v17, %v125_v14  ;;  %v146_v27 = vmul.f32 %v141_v15, %v1445_v20 }
  0x41   :  { %1190 = vmatprep.subr.bf16.mxu1 %v1471_v18  ;;  %1226 = vmatprep.subr.bf16.mxu0 %v1471_v18  ;;  %v1480_v4 = vand.u32 4294901760, %v113_v19  ;;  %v1483_v13 = vsub.f32 %v73_v61, %v1463_v10  ;;  %v1486_v28 = vsub.f32 %v77_v62, %v1465_v11  ;;  %v148_v20 = vmul.f32 %v139_v9, %v1447_v21 }
  0x42   :  { %1192 = vmatpush3.bf16.xpose.msra.mxu1 %v1471_v18  ;;  %1228 = vmatpush3.bf16.xpose.msra.mxu0 %v1471_v18  ;;  %v137_v29 = vadd.f32 %v136_v6, %v135_v26  ;;  %v143_v30 = vadd.f32 %v142_v22, %v133_v25  ;;  %v1503_v21 = vsub.f32 %v109_v1, %v1475_v24 }
  0x43   :  { %v1493_v31 = vpack.c.bf16 %v1480_v4, %v1475_v24  ;;  %v231_v32 = vand.u32 4294901760, %v1483_v13  ;;  %v241_v33 = vand.u32 4294901760, %v1486_v28  ;;  %v1507_v41 = vsub.f32 %v113_v19, %v1480_v4 }
  0x44   :  { %v145_v34 = vsub.f32 %v143_v30, %v144_v23  ;;  %v147_v35 = vadd.f32 %v146_v27, %v137_v29  ;;  %v251_v44 = vand.u32 4294901760, %v1503_v21  ;;  %v1213_v2 = vpack.c.bf16 %v1486_v28, %v1483_v13 }
  0x45   :  { %1194 = vmatprep.subr.bf16.mxu1 %v1493_v31  ;;  %1230 = vmatprep.subr.bf16.mxu0 %v1493_v31  ;;  %v232_v36 = vsub.f32 %v1483_v13, %v231_v32  ;;  %v242_v40 = vsub.f32 %v1486_v28, %v241_v33  ;;  %v261_v46 = vand.u32 4294901760, %v1507_v41  ;;  %v1237_v47 = vpack.c.bf16 %v241_v33, %v231_v32 }
  0x46   :  { %v149_v37 = vadd.f32 %v148_v20, %v147_v35  ;;  %v1500_v38 = vand.u32 4294901760, %v145_v34  ;;  %1138 = vmatprep.mubr.f32.mxu0 %v231_v32  ;;  %v252_v48 = vsub.f32 %v1503_v21, %v251_v44  ;;  %v1217_v3 = vpack.c.bf16 %v1507_v41, %v1503_v21 }
  0x47   :  { %v233_v39 = vand.u32 4294901760, %v232_v36  ;;  %v243_v45 = vand.u32 4294901760, %v242_v40  ;;  %v262_v50 = vsub.f32 %v1507_v41, %v261_v46  ;;  %v1241_v58 = vpack.c.bf16 %v261_v46, %v251_v44 }
  0x48   :  { %v1509_v42 = vand.u32 4294901760, %v149_v37  ;;  %v1524_v51 = vsub.f32 %v145_v34, %v1500_v38  ;;  %v253_v53 = vand.u32 4294901760, %v252_v48 }
  0x49   :  { %1075 = vmatprep.mubr.f32.mxu1 %v233_v39  ;;  %v1201_v49 = vpack.c.bf16 %v243_v45, %v233_v39  ;;  %v263_v54 = vand.u32 4294901760, %v262_v50 }
  0x4a   :  { %1196 = vmatpush3.bf16.xpose.msra.mxu1 %v1493_v31  ;;  %1232 = vmatpush3.bf16.xpose.msra.mxu0 %v1493_v31  ;;  %v1515_v43 = vpack.c.bf16 %v1509_v42, %v1500_v38  ;;  %v1527_v52 = vsub.f32 %v149_v37, %v1509_v42  ;;  %v271_v55 = vand.u32 4294901760, %v1524_v51 }
  0x4b   :  { %v1205_v57 = vpack.c.bf16 %v263_v54, %v253_v53 }
  0x4c   :  { %1198 = vmatprep.subr.bf16.mxu1 %v1515_v43  ;;  %1234 = vmatprep.subr.bf16.mxu0 %v1515_v43  ;;  %v281_v56 = vand.u32 4294901760, %v1527_v52  ;;  %v272_v59 = vsub.f32 %v1524_v51, %v271_v55  ;;  %v1221_v5 = vpack.c.bf16 %v1527_v52, %v1524_v51 }
  0x4e   :  { %v282_v60 = vsub.f32 %v1527_v52, %v281_v56  ;;  %v273_v61 = vand.u32 4294901760, %v272_v59  ;;  %v1245_v0 = vpack.c.bf16 %v281_v56, %v271_v55 }
  0x50   :  { %v283_v62 = vand.u32 4294901760, %v282_v60 }
  0x52   :  { %1200 = vmatpush3.bf16.xpose.msra.mxu1 %v1515_v43  ;;  %1236 = vmatpush3.bf16.xpose.msra.mxu0 %v1515_v43  ;;  %v1209_v63 = vpack.c.bf16 %v283_v62, %v273_v61 }
  0x53   :  { %1202 = vmatprep.subr.bf16.mxu1 %v1201_v49  ;;  %1238 = vmatprep.subr.bf16.mxu0 %v1237_v47 }
  0x59   :  { %1076 = vmatmul.mubr.f32.vlgmr.msra.gmra.mrb[0].mxu1 %v243_v45  ;;  %1139 = vmatmul.mubr.f32.vlgmr.msra.gmra.mrb[0].mxu0 %v241_v33 }
  0x5a   :  { %1204 = vmatpush3.bf16.xpose.msra.mxu1 %v1201_v49  ;;  %1240 = vmatpush3.bf16.xpose.msra.mxu0 %v1237_v47 }
  0x5b   :  { %1206 = vmatprep.subr.bf16.mxu1 %v1205_v57  ;;  %1242 = vmatprep.subr.bf16.mxu0 %v1241_v58 }
  0x5c   :  { %1078 = vmatprep.mubr.f32.mxu1 %v253_v53  ;;  %1141 = vmatprep.mubr.f32.mxu0 %v251_v44 }
  0x5d   :  { %1079 = vmatmul.mubr.f32.gmra.mrb[2].mxu1 %v263_v54  ;;  %1142 = vmatmul.mubr.f32.gmra.mrb[2].mxu0 %v261_v46 }
  0x5e   :  { %1081 = vmatprep.mubr.f32.mxu1 %v273_v61  ;;  %1144 = vmatprep.mubr.f32.mxu0 %v271_v55 }
  0x61   :  { %1082 = vmatmul.mubr.f32.gmra.mrb[4].mxu1 %v283_v62  ;;  %1145 = vmatmul.mubr.f32.gmra.mrb[4].mxu0 %v281_v56 }
  0x62   :  { %1208 = vmatpush3.bf16.xpose.msra.mxu1 %v1205_v57  ;;  %1244 = vmatpush3.bf16.xpose.msra.mxu0 %v1241_v58 }
  0x63   :  { %1210 = vmatprep.subr.bf16.mxu1 %v1209_v63  ;;  %1246 = vmatprep.subr.bf16.mxu0 %v1245_v0 }
  0x64   :  { %1096 = vmatprep.mubr.f32.mxu1 %v1463_v10  ;;  %1159 = vmatprep.mubr.f32.mxu0 %v1463_v10 }
  0x6a   :  { %1212 = vmatpush3.bf16.xpose.msra.mxu1 %v1209_v63  ;;  %1248 = vmatpush3.bf16.xpose.msra.mxu0 %v1245_v0 }
  0x6b   :  { %1214 = vmatprep.subr.bf16.mxu1 %v1213_v2  ;;  %1250 = vmatprep.subr.bf16.mxu0 %v1471_v18 }
  0x71   :  { %1097 = vmatmul.mubr.f32.vlgmr.msra.gmra.mrb[0].mxu1 %v1465_v11  ;;  %1160 = vmatmul.mubr.f32.vlgmr.msra.gmra.mrb[0].mxu0 %v1465_v11 }
  0x72   :  { %1216 = vmatpush3.bf16.xpose.msra.mxu1 %v1213_v2  ;;  %1252 = vmatpush3.bf16.xpose.msra.mxu0 %v1471_v18 }
  0x73   :  { %1218 = vmatprep.subr.bf16.mxu1 %v1217_v3  ;;  %1254 = vmatprep.subr.bf16.mxu0 %v1493_v31 }
  0x74   :  { %1099 = vmatprep.mubr.f32.mxu1 %v1475_v24  ;;  %1162 = vmatprep.mubr.f32.mxu0 %v1475_v24 }
  0x75   :  { %1100 = vmatmul.mubr.f32.gmra.mrb[2].mxu1 %v1480_v4  ;;  %1163 = vmatmul.mubr.f32.gmra.mrb[2].mxu0 %v1480_v4 }
  0x76   :  { %1102 = vmatprep.mubr.f32.mxu1 %v1500_v38  ;;  %1165 = vmatprep.mubr.f32.mxu0 %v1500_v38 }
  0x79   :  { %1103 = vmatmul.mubr.f32.gmra.mrb[4].mxu1 %v1509_v42  ;;  %1166 = vmatmul.mubr.f32.gmra.mrb[4].mxu0 %v1509_v42 }
  0x7a   :  { %1220 = vmatpush3.bf16.xpose.msra.mxu1 %v1217_v3  ;;  %1256 = vmatpush3.bf16.xpose.msra.mxu0 %v1493_v31 }
  0x7b   :  { %1222 = vmatprep.subr.bf16.mxu1 %v1221_v5  ;;  %1258 = vmatprep.subr.bf16.mxu0 %v1515_v43 }
  0x7c   :  { %1117 = vmatprep.mubr.f32.mxu1 %v1483_v13  ;;  %1180 = vmatprep.mubr.f32.mxu0 %v1463_v10 }
  0x82   :  { %1224 = vmatpush3.bf16.xpose.msra.mxu1 %v1221_v5  ;;  %1260 = vmatpush3.bf16.xpose.msra.mxu0 %v1515_v43 }
  0x89   :  { %1118 = vmatmul.mubr.f32.vlgmr.msra.gmra.mrb[0].mxu1 %v1486_v28  ;;  %1181 = vmatmul.mubr.f32.vlgmr.msra.gmra.mrb[0].mxu0 %v1465_v11 }
  0x8a   :  { %1120 = vmatprep.mubr.f32.mxu1 %v1503_v21  ;;  %1183 = vmatprep.mubr.f32.mxu0 %v1475_v24 }
  0x8d   :  { %1121 = vmatmul.mubr.f32.gmra.mrb[2].mxu1 %v1507_v41  ;;  %1184 = vmatmul.mubr.f32.gmra.mrb[2].mxu0 %v1480_v4 }
  0x8e   :  { %1123 = vmatprep.mubr.f32.mxu1 %v1524_v51  ;;  %1186 = vmatprep.mubr.f32.mxu0 %v1500_v38 }
  0x91   :  { %1124 = vmatmul.mubr.f32.gmra.mrb[4].mxu1 %v1527_v52  ;;  %1187 = vmatmul.mubr.f32.gmra.mrb[4].mxu0 %v1509_v42 }
 0x15c   :  { %v1119_v7 = vpop.f32.mrb[0].mxu1  ;;  %v1182_v8 = vpop.f32.mrb[0].mxu0 }
 0x15d   :  { %v1261_v9 = vadd.f32 %v1182_v8, %v1119_v7  ;;  %v500_v10 = vpop.f32.mrb[1].mxu1  ;;  %v850_v11 = vpop.f32.mrb[1].mxu0 }
 0x15e   :  { %v1262_v12 = vadd.f32 %v850_v11, %v500_v10 }
 0x160   :  { %v1122_v14 = vpop.f32.mrb[2].mxu1  ;;  %v1185_v15 = vpop.f32.mrb[2].mxu0 }
 0x161   :  { %v1263_v1 = vadd.f32 %v1185_v15, %v1122_v14  ;;  %v514_v16 = vpop.f32.mrb[3].mxu1  ;;  %v862_v17 = vpop.f32.mrb[3].mxu0 }
 0x162   :  { %v1264_v6 = vadd.f32 %v862_v17, %v514_v16 }
 0x163   :  { %911 = vrot.lane.b32.xlu0 %v1263_v1, %s1383_s2 }
 0x164   :  { %v1125_v18 = vpop.f32.mrb[4].mxu1  ;;  %v1188_v19 = vpop.f32.mrb[4].mxu0 }
 0x165   :  { %v1265_v22 = vadd.f32 %v1188_v19, %v1125_v18  ;;  %v528_v23 = vpop.f32.mrb[5].mxu1  ;;  %v874_v24 = vpop.f32.mrb[5].mxu0 }
 0x166   :  { %v1266_v25 = vadd.f32 %v874_v24, %v528_v23 }
 0x167   :  { %916 = vrot.lane.b32.xlu0 %v1264_v6, %s1383_s2  ;;  %941 = vrot.lane.b32.xlu1 %v1265_v22, %s1383_s2 }
 0x16b   :  { %885 = vrot.lane.b32.xlu0 %v1261_v9, %s1383_s2  ;;  %946 = vrot.lane.b32.xlu1 %v1266_v25, %s1383_s2 }
 0x16f   :  { %890 = vrot.lane.b32.xlu1 %v1262_v12, %s1383_s2 }
 0x1d5   :  { %v912_v26 = vpop.permute.xlu0 %911 }
 0x1d6   :  { %v914_v27 = vadd.f32 %v1264_v6, %v912_v26 }
 0x1d8   :  { %v920_v29 = vmul.f32 %v914_v27, %v914_v27 }
 0x1d9   :  { %v917_v4 = vpop.permute.xlu0 %916  ;;  %v942_v13 = vpop.permute.xlu1 %941 }
 0x1da   :  { %v919_v28 = vsub.f32 %v1263_v1, %v917_v4  ;;  %v944_v20 = vadd.f32 %v1266_v25, %v942_v13 }
 0x1dc   :  { %v921_v30 = vmul.f32 %v919_v28, %v919_v28  ;;  %v950_v34 = vmul.f32 %v944_v20, %v944_v20 }
 0x1dd   :  { %v947_v31 = vpop.permute.xlu1 %946  ;;  %v886_v38 = vpop.permute.xlu0 %885 }
 0x1de   :  { %v922_v32 = vadd.f32 %v921_v30, %v920_v29  ;;  %v949_v33 = vsub.f32 %v1265_v22, %v947_v31  ;;  %v888_v39 = vadd.f32 %v1262_v12, %v886_v38 }
 0x1e0   :  { %v951_v35 = vmul.f32 %v949_v33, %v949_v33  ;;  %924 = vrot.lane.b32.xlu0 %v922_v32, %s1384_s18  ;;  %v894_v41 = vmul.f32 %v888_v39, %v888_v39 }
 0x1e1   :  { %v891_v37 = vpop.permute.xlu1 %890 }
 0x1e2   :  { %v952_v36 = vadd.f32 %v951_v35, %v950_v34  ;;  %v893_v21 = vsub.f32 %v1261_v9, %v891_v37 }
 0x1e4   :  { %954 = vrot.lane.b32.xlu1 %v952_v36, %s1385_s19  ;;  %v895_v40 = vmul.f32 %v893_v21, %v893_v21 }
 0x1e6   :  { %v896_v42 = vadd.f32 %v895_v40, %v894_v41 }
 0x1e8   :  { %v898_v43 = vsel %vm897_vm0, %v896_v42, 0.0 }
 0x1ff   :  { %899 = vadd.xlane.f32.xlu0 %v898_v43 }
 0x252   :  { %v925_v44 = vpop.permute.xlu0 %924 }
 0x253   :  { %v927_v45 = vsel %vm897_vm0, %v925_v44, 0.0 }
 0x254   :  { %928 = vadd.xlane.f32.xlu1 %v927_v45 }
 0x256   :  { %v955_v46 = vpop.permute.xlu1 %954 }
 0x257   :  { %v957_v47 = vsel %vm897_vm0, %v955_v46, 0.0 }
 0x258   :  { %958 = vadd.xlane.f32.xlu0 %v957_v47 }
 0x28c   :  { %v900_v48 = vpop.xlane.xlu0 %899 }
 0x28d   :  { %v901_v49 = vrot.slane %v900_v48, 4 }
 0x28f   :  { %v902_v50 = vadd.f32 %v901_v49, %v900_v48 }
 0x291   :  { %v903_v51 = vrot.slane %v902_v50, 2 }
 0x293   :  { %v904_v52 = vadd.f32 %v903_v51, %v902_v50 }
 0x295   :  { %v905_v53 = vrot.slane %v904_v52, 1 }
 0x297   :  { %v906_v54 = vadd.f32 %v905_v53, %v904_v52 }
 0x299   :  { %1291 = vpush %v906_v54 }
 0x2ca   :  { %s1292_s20 = spop %1291 }
 0x2cb   :  { %v908_v55 = vstv %s1292_s20 }
 0x2cc   :  { %909 = vst [vmem:[#allocation9] sm:$0xff] %v908_v55 }
 0x2e1   :  { %v929_v56 = vpop.xlane.xlu1 %928 }
 0x2e2   :  { %v930_v57 = vrot.slane %v929_v56, 4 }
 0x2e4   :  { %v931_v58 = vadd.f32 %v930_v57, %v929_v56 }
 0x2e5   :  { %v959_v59 = vpop.xlane.xlu0 %958 }
 0x2e6   :  { %v932_v60 = vrot.slane %v931_v58, 2  ;;  %v960_v61 = vrot.slane %v959_v59, 4 }
 0x2e8   :  { %v933_v62 = vadd.f32 %v932_v60, %v931_v58  ;;  %v961_v63 = vadd.f32 %v960_v61, %v959_v59 }
 0x2ea   :  { %v962_v0 = vrot.slane %v961_v63, 2  ;;  %v934_v2 = vrot.slane %v933_v62, 1 }
 0x2ec   :  { %v963_v3 = vadd.f32 %v962_v0, %v961_v63  ;;  %v935_v5 = vadd.f32 %v934_v2, %v933_v62 }
 0x2ee   :  { %1293 = vpush %v935_v5  ;;  %v964_v7 = vrot.slane %v963_v3, 1 }
 0x2f0   :  { %v965_v8 = vadd.f32 %v964_v7, %v963_v3 }
 0x2f2   :  { %1295 = vpush %v965_v8 }
 0x31f   :  { %s1294_s21 = spop %1293 }
 0x320   :  { %v937_v9 = vstv %s1294_s21 }
 0x321   :  { %939 = vst [vmem:[#allocation9 + $0x8] sm:$0xff] %v937_v9 }
 0x323   :  { %s1296_s24 = spop %1295 }
 0x324   :  { %v967_v10 = vstv %s1296_s24 }
 0x325   :  { %969 = vst [vmem:[#allocation9 + $0x10] sm:$0xff] %v967_v10 }
 0x326   :  { %1361 = shalt.err (!%p1358_p6)
}
 0x327   :  { %s1362_s27 = scalar_lea.hbm %s1588_s3, 384 }
 0x328   :  { %p1363_p7 = scmp.ne.s32.totalorder %s1588_s3, %s1362_s27  ;;  %p1366_p8 = scmp.lt.u32.totalorder %s1362_s27, %s1588_s3 }
 0x32a   :  { %p1368_p9 = pnand %p1366_p8, %p1363_p7 }
 0x32c   :  { %1371 = shalt.err (!%p1368_p9)
}
 0x32d   :  { %981 = dma.vmem_to_hbm [thread:$0]  %s976_s23, 384, %s1588_s3, [#allocation8], %s1381_s8, %s1381_s8, %s1382_s9  }
 0x32e   :  { %1376 = dma.done.wait [#allocation8], 384  }
 0x32f   :  { %1377 = vsyncadd [#allocation8], 4294966912 }
 0x330   :  { %985 = vsyncpa [#allocation7], 1 }
 0x331   :  { %986 = vsyncpa [#allocation8], 1 }

// kernel: tpu_custom_call.1
= control target key start
LH: loop header
LB: loop body
LE: loop exit
PB: predicated region body
PF: predicated region fallthrough
CT: control target
= control target key end

     0   :  { %s1586_s0 = inlined_call_operand.hbm [shape: f32[3], index: 0, kind: input, shape index: {}]   ;;  %s1587_s2 = inlined_call_operand.hbm [shape: f32[3,3,2,8,128], index: 2, kind: input, shape index: {}]   ;;  %s1588_s3 = inlined_call_operand.hbm [shape: f32[3,8,128], index: 3, kind: output, shape index: {}]   ;;  %s1589_s1 = inlined_call_operand.vmem [shape: f32[3], index: 1, kind: input, shape index: {}]  }
   0x1   :  { %s1306_s14 = scalar_lea.hbm %s1586_s0, 16 }
   0x2   :  { %p1307_p0 = scmp.ne.s32.totalorder %s1586_s0, %s1306_s14  ;;  %p1310_p1 = scmp.lt.u32.totalorder %s1306_s14, %s1586_s0 }
   0x4   :  { %p1312_p2 = pnand %p1310_p1, %p1307_p0 }
   0x6   :  { %1315 = shalt.err (!%p1312_p2)  }
   0x7   :  { %s1378_s19 = smov [#allocation4]   ;;  %s10_s24 = sshll.u32 %s1589_s1, 4  ;;  %s11_s24 = int_to_ptr.vmem [resolvable:$true] %s10_s24 }
   0x8   :  { %9 = dma.hbm_to_smem %s1586_s0, 16, %s1378_s19, [#allocation3] }
   0x9   :  { %s1316_s25 = scalar_lea.vmem %s11_s24, 16  ;;  %p1321_p4 = scmp.lt.s32.totalorder %s11_s24, %s11_s24 }
   0xa   :  { %p1317_p3 = scmp.ne.s32.totalorder %s11_s24, %s1316_s25  ;;  %p1322_p5 = scmp.lt.s32.totalorder %s1316_s25, %s1316_s25 }
   0xc   :  { %p1323_p6 = por %p1322_p5, %p1321_p4 }
   0xe   :  { %p1324_p7 = pnand %p1323_p6, %p1317_p3 }
  0x10   :  { %1327 = shalt.err (!%p1324_p7)  }
  0x11   :  { %s1379_s26 = smov [#allocation5]  }
  0x12   :  { %13 = dma.vmem_to_smem %s11_s24, 16, %s1379_s26, [#allocation3] }
  0x13   :  { %1372 = dma.done.wait [#allocation3], 32 }
  0x14   :  { %1373 = vsyncadd [#allocation3], 4294967264 }
  0x15   :  { %15 = sfence }
  0x16   :  { %16 = vsyncpa [#allocation7], 0 }
  0x17   :  { %17 = vsyncpa [#allocation8], 0  ;;  %s1380_s0 = smov [#allocation6]   ;;  %s1328_s29 = scalar_lea.hbm %s1587_s2, 2304 }
  0x18   :  { %s23_s27 = sshll.u32 %s1380_s0, 4  ;;  %p1329_p8 = scmp.ne.s32.totalorder %s1587_s2, %s1328_s29  ;;  %s24_s27 = int_to_ptr.vmem [resolvable:$true] %s23_s27 }
  0x19   :  { %p1332_p9 = scmp.lt.u32.totalorder %s1328_s29, %s1587_s2 }
  0x1b   :  { %p1334_p10 = pnand %p1332_p9, %p1329_p8 }
  0x1d   :  { %1337 = shalt.err (!%p1334_p10)
}
  0x1e   :  { %s1338_s7 = scalar_lea.vmem %s24_s27, 2304  ;;  %p1343_p12 = scmp.lt.s32.totalorder %s24_s27, %s24_s27 }
  0x1f   :  { %p1339_p11 = scmp.ne.s32.totalorder %s24_s27, %s1338_s7  ;;  %p1344_p13 = scmp.lt.s32.totalorder %s1338_s7, %s1338_s7 }
  0x21   :  { %p1345_p0 = por %p1344_p13, %p1343_p12 }
  0x23   :  { %p1346_p1 = pnand %p1345_p0, %p1339_p11 }
  0x25   :  { %1349 = shalt.err (!%p1346_p1)
}
  0x26   :  { %s1381_s8 = smov 128   ;;  %s1382_s9 = smov 8  }
  0x27   :  { %29 = dma.hbm_to_vmem [thread:$0]  %s1587_s2, 2304, %s24_s27, [#allocation7], %s1381_s8, %s1381_s8, %s1382_s9  }
  0x28   :  { %1374 = dma.done.wait [#allocation7], 2304  }
  0x29   :  { %1375 = vsyncadd [#allocation7], 4294964992  ;;  %s33_s12 = sld [smem:[#allocation4]]  ;;  %s987_s13 = sld [smem:[#allocation4 + $0x1]]  ;;  %v39_v0 = vld [vmem:[#allocation6] sm:$0xff]  ;;  %v43_v2 = vld [vmem:[#allocation6 + $0x8] sm:$0xff] }
  0x2a   :  { %s988_s14 = sld [smem:[#allocation4 + $0x2]]  ;;  %s36_s15 = sld [smem:[#allocation5]]  ;;  %v51_v3 = vld [vmem:[#allocation6 + $0x10] sm:$0xff]  ;;  %v53_v8 = vld [vmem:[#allocation6 + $0x18] sm:$0xff]  ;;  %v65_v10 = vld [vmem:[#allocation6 + $0x20] sm:$0xff]  ;;  %vm897_vm0 = vcmask 64512  }
  0x2b   :  { %s989_s16 = sld [smem:[#allocation5 + $0x1]]  ;;  %s990_s17 = sld [smem:[#allocation5 + $0x2]]  ;;  %v67_v15 = vld [vmem:[#allocation6 + $0x28] sm:$0xff]  ;;  %v81_v16 = vld [vmem:[#allocation6 + $0x30] sm:$0xff]  ;;  %v84_v17 = vld [vmem:[#allocation6 + $0x38] sm:$0xff] }
  0x2c   :  { %v91_v26 = vld [vmem:[#allocation6 + $0x40] sm:$0xff]  ;;  %v93_v27 = vld [vmem:[#allocation6 + $0x48] sm:$0xff]  ;;  %v103_v36 = vld [vmem:[#allocation6 + $0x50] sm:$0xff]  ;;  %s1383_s2 = smov 120   ;;  %s1384_s18 = smov 112  }
  0x2d   :  { %v105_v37 = vld [vmem:[#allocation6 + $0x58] sm:$0xff]  ;;  %v117_v46 = vld [vmem:[#allocation6 + $0x60] sm:$0xff]  ;;  %v120_v47 = vld [vmem:[#allocation6 + $0x68] sm:$0xff]  ;;  %s1385_s19 = smov 96   ;;  %s1386_s22 = smov [#allocation9]  }
  0x2e   :  { %v127_v56 = vld [vmem:[#allocation6 + $0x70] sm:$0xff]  ;;  %s975_s23 = sshll.u32 %s1386_s22, 4  ;;  %s976_s23 = int_to_ptr.vmem [resolvable:$true] %s975_s23 }
  0x2f   :  { %v40_v1 = vstv %s33_s12  ;;  %v1437_v4 = vstv %s987_s13  ;;  %s1350_s25 = scalar_lea.vmem %s976_s23, 384  ;;  %p1355_p3 = scmp.lt.s32.totalorder %s976_s23, %s976_s23 }
  0x30   :  { %v41_v5 = vmul.f32 %v40_v1, %v39_v0  ;;  %v44_v6 = vstv %s36_s15  ;;  %v47_v7 = vmul.f32 %v43_v2, %v40_v1  ;;  %v55_v9 = vmul.f32 %v1437_v4, %v51_v3  ;;  %p1351_p2 = scmp.ne.s32.totalorder %s976_s23, %s1350_s25  ;;  %p1356_p4 = scmp.lt.s32.totalorder %s1350_s25, %s1350_s25 }
  0x31   :  { %v45_v11 = vmul.f32 %v44_v6, %v43_v2  ;;  %v48_v12 = vmul.f32 %v44_v6, %v39_v0  ;;  %v1440_v13 = vstv %s989_s16  ;;  %v60_v14 = vmul.f32 %v1437_v4, %v53_v8  ;;  %v129_v2 = vld [vmem:[#allocation6 + $0x78] sm:$0xff] }
  0x32   :  { %v58_v18 = vmul.f32 %v1440_v13, %v53_v8  ;;  %v62_v19 = vmul.f32 %v1440_v13, %v51_v3  ;;  %v1445_v20 = vstv %s988_s14  ;;  %v1447_v21 = vstv %s990_s17  ;;  %p1357_p5 = por %p1356_p4, %p1355_p3 }
  0x33   :  { %v46_v22 = vsub.f32 %v41_v5, %v45_v11  ;;  %v49_v23 = vadd.f32 %v48_v12, %v47_v7  ;;  %v69_v24 = vmul.f32 %v1445_v20, %v65_v10  ;;  %v72_v25 = vmul.f32 %v1447_v21, %v67_v15 }
  0x34   :  { %v74_v28 = vmul.f32 %v1445_v20, %v67_v15  ;;  %v76_v29 = vmul.f32 %v1447_v21, %v65_v10  ;;  %v82_v30 = vmul.f32 %v81_v16, %v40_v1  ;;  %v85_v31 = vmul.f32 %v84_v17, %v44_v6  ;;  %v141_v15 = vld [vmem:[#allocation6 + $0x88] sm:$0xff]  ;;  %p1358_p6 = pnand %p1357_p5, %p1351_p2 }
  0x35   :  { %v56_v32 = vadd.f32 %v55_v9, %v46_v22  ;;  %v61_v33 = vadd.f32 %v60_v14, %v49_v23  ;;  %v87_v34 = vmul.f32 %v84_v17, %v40_v1  ;;  %v88_v35 = vmul.f32 %v81_v16, %v44_v6  ;;  %v139_v9 = vld [vmem:[#allocation6 + $0x80] sm:$0xff] }
  0x36   :  { %v86_v38 = vsub.f32 %v82_v30, %v85_v31  ;;  %v94_v39 = vmul.f32 %v91_v26, %v1437_v4  ;;  %v96_v40 = vmul.f32 %v93_v27, %v1440_v13  ;;  %v98_v41 = vmul.f32 %v93_v27, %v1437_v4 }
  0x37   :  { %v59_v42 = vsub.f32 %v56_v32, %v58_v18  ;;  %v63_v43 = vadd.f32 %v62_v19, %v61_v33  ;;  %v89_v44 = vadd.f32 %v88_v35, %v87_v34  ;;  %v100_v45 = vmul.f32 %v91_v26, %v1440_v13 }
  0x38   :  { %v95_v48 = vadd.f32 %v94_v39, %v86_v38  ;;  %v106_v49 = vmul.f32 %v103_v36, %v1445_v20  ;;  %v108_v50 = vmul.f32 %v105_v37, %v1447_v21  ;;  %v110_v51 = vmul.f32 %v105_v37, %v1445_v20 }
  0x39   :  { %v70_v52 = vadd.f32 %v69_v24, %v59_v42  ;;  %v75_v53 = vadd.f32 %v74_v28, %v63_v43  ;;  %v99_v54 = vadd.f32 %v98_v41, %v89_v44  ;;  %v112_v55 = vmul.f32 %v103_v36, %v1447_v21 }
  0x3a   :  { %v97_v57 = vsub.f32 %v95_v48, %v96_v40  ;;  %v118_v58 = vmul.f32 %v117_v46, %v40_v1  ;;  %v121_v59 = vmul.f32 %v120_v47, %v44_v6  ;;  %v123_v60 = vmul.f32 %v120_v47, %v40_v1 }
  0x3b   :  { %v73_v61 = vsub.f32 %v70_v52, %v72_v25  ;;  %v77_v62 = vadd.f32 %v76_v29, %v75_v53  ;;  %v101_v63 = vadd.f32 %v100_v45, %v99_v54  ;;  %v124_v0 = vmul.f32 %v117_v46, %v44_v6 }
  0x3c   :  { %v107_v3 = vadd.f32 %v106_v49, %v97_v57  ;;  %v122_v5 = vsub.f32 %v118_v58, %v121_v59  ;;  %v130_v7 = vmul.f32 %v127_v56, %v1437_v4  ;;  %v132_v8 = vmul.f32 %v129_v2, %v1440_v13 }
  0x3d   :  { %v1463_v10 = vand.u32 4294901760, %v73_v61  ;;  %v1465_v11 = vand.u32 4294901760, %v77_v62  ;;  %v111_v12 = vadd.f32 %v110_v51, %v101_v63  ;;  %v125_v14 = vadd.f32 %v124_v0, %v123_v60 }
  0x3e   :  { %v109_v1 = vsub.f32 %v107_v3, %v108_v50  ;;  %v131_v16 = vadd.f32 %v130_v7, %v122_v5  ;;  %v134_v17 = vmul.f32 %v129_v2, %v1437_v4  ;;  %v136_v6 = vmul.f32 %v127_v56, %v1440_v13 }
  0x3f   :  { %v1471_v18 = vpack.c.bf16 %v1465_v11, %v1463_v10  ;;  %v113_v19 = vadd.f32 %v112_v55, %v111_v12  ;;  %v142_v22 = vmul.f32 %v139_v9, %v1445_v20  ;;  %v144_v23 = vmul.f32 %v141_v15, %v1447_v21 }
  0x40   :  { %v1475_v24 = vand.u32 4294901760, %v109_v1  ;;  %v133_v25 = vsub.f32 %v131_v16, %v132_v8  ;;  %v135_v26 = vadd.f32 %v134_v17, %v125_v14  ;;  %v146_v27 = vmul.f32 %v141_v15, %v1445_v20 }
  0x41   :  { %1190 = vmatprep.subr.bf16.mxu1 %v1471_v18  ;;  %1226 = vmatprep.subr.bf16.mxu0 %v1471_v18  ;;  %v1480_v4 = vand.u32 4294901760, %v113_v19  ;;  %v1483_v13 = vsub.f32 %v73_v61, %v1463_v10  ;;  %v1486_v28 = vsub.f32 %v77_v62, %v1465_v11  ;;  %v148_v20 = vmul.f32 %v139_v9, %v1447_v21 }
  0x42   :  { %1192 = vmatpush3.bf16.xpose.msra.mxu1 %v1471_v18  ;;  %1228 = vmatpush3.bf16.xpose.msra.mxu0 %v1471_v18  ;;  %v137_v29 = vadd.f32 %v136_v6, %v135_v26  ;;  %v143_v30 = vadd.f32 %v142_v22, %v133_v25  ;;  %v1503_v21 = vsub.f32 %v109_v1, %v1475_v24 }
  0x43   :  { %v1493_v31 = vpack.c.bf16 %v1480_v4, %v1475_v24  ;;  %v231_v32 = vand.u32 4294901760, %v1483_v13  ;;  %v241_v33 = vand.u32 4294901760, %v1486_v28  ;;  %v1507_v41 = vsub.f32 %v113_v19, %v1480_v4 }
  0x44   :  { %v145_v34 = vsub.f32 %v143_v30, %v144_v23  ;;  %v147_v35 = vadd.f32 %v146_v27, %v137_v29  ;;  %v251_v44 = vand.u32 4294901760, %v1503_v21  ;;  %v1213_v2 = vpack.c.bf16 %v1486_v28, %v1483_v13 }
  0x45   :  { %1194 = vmatprep.subr.bf16.mxu1 %v1493_v31  ;;  %1230 = vmatprep.subr.bf16.mxu0 %v1493_v31  ;;  %v232_v36 = vsub.f32 %v1483_v13, %v231_v32  ;;  %v242_v40 = vsub.f32 %v1486_v28, %v241_v33  ;;  %v261_v46 = vand.u32 4294901760, %v1507_v41  ;;  %v1237_v47 = vpack.c.bf16 %v241_v33, %v231_v32 }
  0x46   :  { %v149_v37 = vadd.f32 %v148_v20, %v147_v35  ;;  %v1500_v38 = vand.u32 4294901760, %v145_v34  ;;  %1138 = vmatprep.mubr.f32.mxu0 %v231_v32  ;;  %v252_v48 = vsub.f32 %v1503_v21, %v251_v44  ;;  %v1217_v3 = vpack.c.bf16 %v1507_v41, %v1503_v21 }
  0x47   :  { %v233_v39 = vand.u32 4294901760, %v232_v36  ;;  %v243_v45 = vand.u32 4294901760, %v242_v40  ;;  %v262_v50 = vsub.f32 %v1507_v41, %v261_v46  ;;  %v1241_v58 = vpack.c.bf16 %v261_v46, %v251_v44 }
  0x48   :  { %v1509_v42 = vand.u32 4294901760, %v149_v37  ;;  %v1524_v51 = vsub.f32 %v145_v34, %v1500_v38  ;;  %v253_v53 = vand.u32 4294901760, %v252_v48 }
  0x49   :  { %1075 = vmatprep.mubr.f32.mxu1 %v233_v39  ;;  %v1201_v49 = vpack.c.bf16 %v243_v45, %v233_v39  ;;  %v263_v54 = vand.u32 4294901760, %v262_v50 }
  0x4a   :  { %1196 = vmatpush3.bf16.xpose.msra.mxu1 %v1493_v31  ;;  %1232 = vmatpush3.bf16.xpose.msra.mxu0 %v1493_v31  ;;  %v1515_v43 = vpack.c.bf16 %v1509_v42, %v1500_v38  ;;  %v1527_v52 = vsub.f32 %v149_v37, %v1509_v42  ;;  %v271_v55 = vand.u32 4294901760, %v1524_v51 }
  0x4b   :  { %v1205_v57 = vpack.c.bf16 %v263_v54, %v253_v53 }
  0x4c   :  { %1198 = vmatprep.subr.bf16.mxu1 %v1515_v43  ;;  %1234 = vmatprep.subr.bf16.mxu0 %v1515_v43  ;;  %v281_v56 = vand.u32 4294901760, %v1527_v52  ;;  %v272_v59 = vsub.f32 %v1524_v51, %v271_v55  ;;  %v1221_v5 = vpack.c.bf16 %v1527_v52, %v1524_v51 }
  0x4e   :  { %v282_v60 = vsub.f32 %v1527_v52, %v281_v56  ;;  %v273_v61 = vand.u32 4294901760, %v272_v59  ;;  %v1245_v0 = vpack.c.bf16 %v281_v56, %v271_v55 }
  0x50   :  { %v283_v62 = vand.u32 4294901760, %v282_v60 }
  0x52   :  { %1200 = vmatpush3.bf16.xpose.msra.mxu1 %v1515_v43  ;;  %1236 = vmatpush3.bf16.xpose.msra.mxu0 %v1515_v43  ;;  %v1209_v63 = vpack.c.bf16 %v283_v62, %v273_v61 }
  0x53   :  { %1202 = vmatprep.subr.bf16.mxu1 %v1201_v49  ;;  %1238 = vmatprep.subr.bf16.mxu0 %v1237_v47 }
  0x59   :  { %1076 = vmatmul.mubr.f32.vlgmr.msra.gmra.mrb[0].mxu1 %v243_v45  ;;  %1139 = vmatmul.mubr.f32.vlgmr.msra.gmra.mrb[0].mxu0 %v241_v33 }
  0x5a   :  { %1204 = vmatpush3.bf16.xpose.msra.mxu1 %v1201_v49  ;;  %1240 = vmatpush3.bf16.xpose.msra.mxu0 %v1237_v47 }
  0x5b   :  { %1206 = vmatprep.subr.bf16.mxu1 %v1205_v57  ;;  %1242 = vmatprep.subr.bf16.mxu0 %v1241_v58 }
  0x5c   :  { %1078 = vmatprep.mubr.f32.mxu1 %v253_v53  ;;  %1141 = vmatprep.mubr.f32.mxu0 %v251_v44 }
  0x5d   :  { %1079 = vmatmul.mubr.f32.gmra.mrb[2].mxu1 %v263_v54  ;;  %1142 = vmatmul.mubr.f32.gmra.mrb[2].mxu0 %v261_v46 }
  0x5e   :  { %1081 = vmatprep.mubr.f32.mxu1 %v273_v61  ;;  %1144 = vmatprep.mubr.f32.mxu0 %v271_v55 }
  0x61   :  { %1082 = vmatmul.mubr.f32.gmra.mrb[4].mxu1 %v283_v62  ;;  %1145 = vmatmul.mubr.f32.gmra.mrb[4].mxu0 %v281_v56 }
  0x62   :  { %1208 = vmatpush3.bf16.xpose.msra.mxu1 %v1205_v57  ;;  %1244 = vmatpush3.bf16.xpose.msra.mxu0 %v1241_v58 }
  0x63   :  { %1210 = vmatprep.subr.bf16.mxu1 %v1209_v63  ;;  %1246 = vmatprep.subr.bf16.mxu0 %v1245_v0 }
  0x64   :  { %1096 = vmatprep.mubr.f32.mxu1 %v1463_v10  ;;  %1159 = vmatprep.mubr.f32.mxu0 %v1463_v10 }
  0x6a   :  { %1212 = vmatpush3.bf16.xpose.msra.mxu1 %v1209_v63  ;;  %1248 = vmatpush3.bf16.xpose.msra.mxu0 %v1245_v0 }
  0x6b   :  { %1214 = vmatprep.subr.bf16.mxu1 %v1213_v2  ;;  %1250 = vmatprep.subr.bf16.mxu0 %v1471_v18 }
  0x71   :  { %1097 = vmatmul.mubr.f32.vlgmr.msra.gmra.mrb[0].mxu1 %v1465_v11  ;;  %1160 = vmatmul.mubr.f32.vlgmr.msra.gmra.mrb[0].mxu0 %v1465_v11 }
  0x72   :  { %1216 = vmatpush3.bf16.xpose.msra.mxu1 %v1213_v2  ;;  %1252 = vmatpush3.bf16.xpose.msra.mxu0 %v1471_v18 }
  0x73   :  { %1218 = vmatprep.subr.bf16.mxu1 %v1217_v3  ;;  %1254 = vmatprep.subr.bf16.mxu0 %v1493_v31 }
  0x74   :  { %1099 = vmatprep.mubr.f32.mxu1 %v1475_v24  ;;  %1162 = vmatprep.mubr.f32.mxu0 %v1475_v24 }
  0x75   :  { %1100 = vmatmul.mubr.f32.gmra.mrb[2].mxu1 %v1480_v4  ;;  %1163 = vmatmul.mubr.f32.gmra.mrb[2].mxu0 %v1480_v4 }
  0x76   :  { %1102 = vmatprep.mubr.f32.mxu1 %v1500_v38  ;;  %1165 = vmatprep.mubr.f32.mxu0 %v1500_v38 }
  0x79   :  { %1103 = vmatmul.mubr.f32.gmra.mrb[4].mxu1 %v1509_v42  ;;  %1166 = vmatmul.mubr.f32.gmra.mrb[4].mxu0 %v1509_v42 }
  0x7a   :  { %1220 = vmatpush3.bf16.xpose.msra.mxu1 %v1217_v3  ;;  %1256 = vmatpush3.bf16.xpose.msra.mxu0 %v1493_v31 }
  0x7b   :  { %1222 = vmatprep.subr.bf16.mxu1 %v1221_v5  ;;  %1258 = vmatprep.subr.bf16.mxu0 %v1515_v43 }
  0x7c   :  { %1117 = vmatprep.mubr.f32.mxu1 %v1483_v13  ;;  %1180 = vmatprep.mubr.f32.mxu0 %v1463_v10 }
  0x82   :  { %1224 = vmatpush3.bf16.xpose.msra.mxu1 %v1221_v5  ;;  %1260 = vmatpush3.bf16.xpose.msra.mxu0 %v1515_v43 }
  0x89   :  { %1118 = vmatmul.mubr.f32.vlgmr.msra.gmra.mrb[0].mxu1 %v1486_v28  ;;  %1181 = vmatmul.mubr.f32.vlgmr.msra.gmra.mrb[0].mxu0 %v1465_v11 }
  0x8a   :  { %1120 = vmatprep.mubr.f32.mxu1 %v1503_v21  ;;  %1183 = vmatprep.mubr.f32.mxu0 %v1475_v24 }
  0x8d   :  { %1121 = vmatmul.mubr.f32.gmra.mrb[2].mxu1 %v1507_v41  ;;  %1184 = vmatmul.mubr.f32.gmra.mrb[2].mxu0 %v1480_v4 }
  0x8e   :  { %1123 = vmatprep.mubr.f32.mxu1 %v1524_v51  ;;  %1186 = vmatprep.mubr.f32.mxu0 %v1500_v38 }
  0x91   :  { %1124 = vmatmul.mubr.f32.gmra.mrb[4].mxu1 %v1527_v52  ;;  %1187 = vmatmul.mubr.f32.gmra.mrb[4].mxu0 %v1509_v42 }
 0x15c   :  { %v1119_v7 = vpop.f32.mrb[0].mxu1  ;;  %v1182_v8 = vpop.f32.mrb[0].mxu0 }
 0x15d   :  { %v1261_v9 = vadd.f32 %v1182_v8, %v1119_v7  ;;  %v500_v10 = vpop.f32.mrb[1].mxu1  ;;  %v850_v11 = vpop.f32.mrb[1].mxu0 }
 0x15e   :  { %v1262_v12 = vadd.f32 %v850_v11, %v500_v10 }
 0x160   :  { %v1122_v14 = vpop.f32.mrb[2].mxu1  ;;  %v1185_v15 = vpop.f32.mrb[2].mxu0 }
 0x161   :  { %v1263_v1 = vadd.f32 %v1185_v15, %v1122_v14  ;;  %v514_v16 = vpop.f32.mrb[3].mxu1  ;;  %v862_v17 = vpop.f32.mrb[3].mxu0 }
 0x162   :  { %v1264_v6 = vadd.f32 %v862_v17, %v514_v16 }
 0x163   :  { %911 = vrot.lane.b32.xlu0 %v1263_v1, %s1383_s2 }
 0x164   :  { %v1125_v18 = vpop.f32.mrb[4].mxu1  ;;  %v1188_v19 = vpop.f32.mrb[4].mxu0 }
 0x165   :  { %v1265_v22 = vadd.f32 %v1188_v19, %v1125_v18  ;;  %v528_v23 = vpop.f32.mrb[5].mxu1  ;;  %v874_v24 = vpop.f32.mrb[5].mxu0 }
 0x166   :  { %v1266_v25 = vadd.f32 %v874_v24, %v528_v23 }
 0x167   :  { %916 = vrot.lane.b32.xlu0 %v1264_v6, %s1383_s2  ;;  %941 = vrot.lane.b32.xlu1 %v1265_v22, %s1383_s2 }
 0x16b   :  { %885 = vrot.lane.b32.xlu0 %v1261_v9, %s1383_s2  ;;  %946 = vrot.lane.b32.xlu1 %v1266_v25, %s1383_s2 }
 0x16f   :  { %890 = vrot.lane.b32.xlu1 %v1262_v12, %s1383_s2 }
 0x1d5   :  { %v912_v26 = vpop.permute.xlu0 %911 }
 0x1d6   :  { %v914_v27 = vadd.f32 %v1264_v6, %v912_v26 }
 0x1d8   :  { %v920_v29 = vmul.f32 %v914_v27, %v914_v27 }
 0x1d9   :  { %v917_v4 = vpop.permute.xlu0 %916  ;;  %v942_v13 = vpop.permute.xlu1 %941 }
 0x1da   :  { %v919_v28 = vsub.f32 %v1263_v1, %v917_v4  ;;  %v944_v20 = vadd.f32 %v1266_v25, %v942_v13 }
 0x1dc   :  { %v921_v30 = vmul.f32 %v919_v28, %v919_v28  ;;  %v950_v34 = vmul.f32 %v944_v20, %v944_v20 }
 0x1dd   :  { %v947_v31 = vpop.permute.xlu1 %946  ;;  %v886_v38 = vpop.permute.xlu0 %885 }
 0x1de   :  { %v922_v32 = vadd.f32 %v921_v30, %v920_v29  ;;  %v949_v33 = vsub.f32 %v1265_v22, %v947_v31  ;;  %v888_v39 = vadd.f32 %v1262_v12, %v886_v38 }
 0x1e0   :  { %v951_v35 = vmul.f32 %v949_v33, %v949_v33  ;;  %924 = vrot.lane.b32.xlu0 %v922_v32, %s1384_s18  ;;  %v894_v41 = vmul.f32 %v888_v39, %v888_v39 }
 0x1e1   :  { %v891_v37 = vpop.permute.xlu1 %890 }
 0x1e2   :  { %v952_v36 = vadd.f32 %v951_v35, %v950_v34  ;;  %v893_v21 = vsub.f32 %v1261_v9, %v891_v37 }
 0x1e4   :  { %954 = vrot.lane.b32.xlu1 %v952_v36, %s1385_s19  ;;  %v895_v40 = vmul.f32 %v893_v21, %v893_v21 }
 0x1e6   :  { %v896_v42 = vadd.f32 %v895_v40, %v894_v41 }
 0x1e8   :  { %v898_v43 = vsel %vm897_vm0, %v896_v42, 0.0 }
 0x1ff   :  { %899 = vadd.xlane.f32.xlu0 %v898_v43 }
 0x252   :  { %v925_v44 = vpop.permute.xlu0 %924 }
 0x253   :  { %v927_v45 = vsel %vm897_vm0, %v925_v44, 0.0 }
 0x254   :  { %928 = vadd.xlane.f32.xlu1 %v927_v45 }
 0x256   :  { %v955_v46 = vpop.permute.xlu1 %954 }
 0x257   :  { %v957_v47 = vsel %vm897_vm0, %v955_v46, 0.0 }
 0x258   :  { %958 = vadd.xlane.f32.xlu0 %v957_v47 }
 0x28c   :  { %v900_v48 = vpop.xlane.xlu0 %899 }
 0x28d   :  { %v901_v49 = vrot.slane %v900_v48, 4 }
 0x28f   :  { %v902_v50 = vadd.f32 %v901_v49, %v900_v48 }
 0x291   :  { %v903_v51 = vrot.slane %v902_v50, 2 }
 0x293   :  { %v904_v52 = vadd.f32 %v903_v51, %v902_v50 }
 0x295   :  { %v905_v53 = vrot.slane %v904_v52, 1 }
 0x297   :  { %v906_v54 = vadd.f32 %v905_v53, %v904_v52 }
 0x299   :  { %1291 = vpush %v906_v54 }
 0x2ca   :  { %s1292_s20 = spop %1291 }
 0x2cb   :  { %v908_v55 = vstv %s1292_s20 }
 0x2cc   :  { %909 = vst [vmem:[#allocation9] sm:$0xff] %v908_v55 }
 0x2e1   :  { %v929_v56 = vpop.xlane.xlu1 %928 }
 0x2e2   :  { %v930_v57 = vrot.slane %v929_v56, 4 }
 0x2e4   :  { %v931_v58 = vadd.f32 %v930_v57, %v929_v56 }
 0x2e5   :  { %v959_v59 = vpop.xlane.xlu0 %958 }
 0x2e6   :  { %v932_v60 = vrot.slane %v931_v58, 2  ;;  %v960_v61 = vrot.slane %v959_v59, 4 }
 0x2e8   :  { %v933_v62 = vadd.f32 %v932_v60, %v931_v58  ;;  %v961_v63 = vadd.f32 %v960_v61, %v959_v59 }
 0x2ea   :  { %v962_v0 = vrot.slane %v961_v63, 2  ;;  %v934_v2 = vrot.slane %v933_v62, 1 }
 0x2ec   :  { %v963_v3 = vadd.f32 %v962_v0, %v961_v63  ;;  %v935_v5 = vadd.f32 %v934_v2, %v933_v62 }
 0x2ee   :  { %1293 = vpush %v935_v5  ;;  %v964_v7 = vrot.slane %v963_v3, 1 }
 0x2f0   :  { %v965_v8 = vadd.f32 %v964_v7, %v963_v3 }
 0x2f2   :  { %1295 = vpush %v965_v8 }
 0x31f   :  { %s1294_s21 = spop %1293 }
 0x320   :  { %v937_v9 = vstv %s1294_s21 }
 0x321   :  { %939 = vst [vmem:[#allocation9 + $0x8] sm:$0xff] %v937_v9 }
 0x323   :  { %s1296_s24 = spop %1295 }
 0x324   :  { %v967_v10 = vstv %s1296_s24 }
 0x325   :  { %969 = vst [vmem:[#allocation9 + $0x10] sm:$0xff] %v967_v10 }
 0x326   :  { %1361 = shalt.err (!%p1358_p6)
}
 0x327   :  { %s1362_s27 = scalar_lea.hbm %s1588_s3, 384 }
 0x328   :  { %p1363_p7 = scmp.ne.s32.totalorder %s1588_s3, %s1362_s27  ;;  %p1366_p8 = scmp.lt.u32.totalorder %s1362_s27, %s1588_s3 }
 0x32a   :  { %p1368_p9 = pnand %p1366_p8, %p1363_p7 }
 0x32c   :  { %1371 = shalt.err (!%p1368_p9)
}
 0x32d   :  { %981 = dma.vmem_to_hbm [thread:$0]  %s976_s23, 384, %s1588_s3, [#allocation8], %s1381_s8, %s1381_s8, %s1382_s9  }
 0x32e   :  { %1376 = dma.done.wait [#allocation8], 384  }
 0x32f   :  { %1377 = vsyncadd [#allocation8], 4294966912 }
 0x330   :  { %985 = vsyncpa [#allocation7], 1 }
 0x331   :  { %986 = vsyncpa [#allocation8], 1 }

</bundles_post_ra>
